<compile_context>
chip_gen: v7x
topology: tpu7x:2x2x1
jax: 0.10.0
libtpu: 0.0.40
codegen_flags: <defaults>
</compile_context>

<pallas_src>
import jax
import jax.numpy as jnp
from jax.experimental import pallas as pl
from jax.experimental.pallas import tpu as pltpu


def lstm_fused_kernel(x_ref, wih_ref, whh_ref, b_ref, wfc_ref, bfc_ref,
                      out_ref, xg_scr):
    """One grid step = one batch tile: hoisted projection + recurrence + fc."""
    S, Bt, I = x_ref.shape
    Hp4 = wih_ref.shape[1]
    Hp = Hp4 // 4
    mm_dtype = wih_ref.dtype          # f32, or bf16 on v6e/v7x

    # ---- Hoisted input projection: one MXU matmul over ALL time steps ----
    x_all = x_ref[...].reshape(S * Bt, I)                       # collapse (S, Bt)
    xg = jnp.dot(x_all, wih_ref[...], preferred_element_type=jnp.float32)
    # (b_ih + b_hh) folded here once in f32, not once per time step
    xg_scr[...] = xg.reshape(S, Bt, Hp4) + b_ref[...]

    # ---- Recurrence: only h @ W_hh^T sits on the sequential critical path ----
    def step(t, carry):
        h, c = carry                                            # f32 state
        gates = xg_scr[t] + jnp.dot(h.astype(mm_dtype), whh_ref[...],
                                    preferred_element_type=jnp.float32)
        # lane-aligned per-gate slabs (Hp multiple of 128), PyTorch order i,f,g,o
        i_g = jax.nn.sigmoid(gates[:, 0 * Hp:1 * Hp])
        f_g = jax.nn.sigmoid(gates[:, 1 * Hp:2 * Hp])
        g_g = jnp.tanh(gates[:, 2 * Hp:3 * Hp])
        o_g = jax.nn.sigmoid(gates[:, 3 * Hp:4 * Hp])
        c = f_g * c + i_g * g_g
        h = o_g * jnp.tanh(c)
        return (h, c)

    h0 = jnp.zeros((Bt, Hp), jnp.float32)
    c0 = jnp.zeros((Bt, Hp), jnp.float32)
    h_n, _ = jax.lax.fori_loop(0, S, step, (h0, c0), unroll=True)

    # ---- Fused fc on the last hidden state; lane-dense (Bt, Op) store ----
    out_ref[...] = (jnp.dot(h_n.astype(mm_dtype), wfc_ref[...],
                            preferred_element_type=jnp.float32)
                    + bfc_ref[...])


def _round_up(x, m):
    return (x + m - 1) // m * m


def lstm_model_forward(x, params, *, matmul_dtype=jnp.float32):
    """x: (seq_len, batch, input_size) f32. Returns (batch, output_size) f32.

    matmul_dtype=jnp.bfloat16 casts only the MXU operands (x, W_ih, W_hh, W_fc);
    gate math and the c/h state remain f32 inside the kernel.
    """
    S, B, I = x.shape
    H = params["w_hh"].shape[1]
    O = params["w_fc"].shape[0]

    LANE, SUB = 128, 8
    Hp = _round_up(H, LANE)          # lane-aligned per-gate slab width
    Op = _round_up(O, LANE)          # lane-dense output slab
    Bp = _round_up(B, SUB)           # sublane-aligned batch

    # Batch tile: as large as possible (<=128) while keeping the per-tile
    # x-gate scratch (S * Bt * 4Hp f32) within a conservative VMEM budget.
    scratch_budget = 16 * 1024 * 1024
    bt_cap = max(SUB, scratch_budget // max(1, S * 4 * Hp * 4))
    Bt = min(Bp, 128, _round_up(bt_cap, SUB) if bt_cap >= SUB else SUB)
    Bt = max(SUB, (Bt // SUB) * SUB)
    Bp = _round_up(Bp, Bt)

    w_ih = params["w_ih"]                      # (4H, I), gate order i,f,g,o
    w_hh = params["w_hh"]                      # (4H, H)
    b_lstm = params["b_ih"] + params["b_hh"]   # (4H,)

    # Per-gate, lane-aligned weight slabs: columns [k*Hp, k*Hp+H) hold gate k.
    wih_t = jnp.zeros((I, 4 * Hp), jnp.float32)
    whh_t = jnp.zeros((Hp, 4 * Hp), jnp.float32)
    b_pad = jnp.zeros((1, 4 * Hp), jnp.float32)
    for k in range(4):
        wih_t = wih_t.at[:, k * Hp:k * Hp + H].set(w_ih[k * H:(k + 1) * H, :].T)
        whh_t = whh_t.at[:H, k * Hp:k * Hp + H].set(w_hh[k * H:(k + 1) * H, :].T)
        b_pad = b_pad.at[0, k * Hp:k * Hp + H].set(b_lstm[k * H:(k + 1) * H])

    wfc_t = jnp.zeros((Hp, Op), jnp.float32).at[:H, :O].set(params["w_fc"].T)
    bfc = jnp.zeros((1, Op), jnp.float32).at[0, :O].set(params["b_fc"])

    x_pad = jnp.zeros((S, Bp, I), jnp.float32).at[:, :B, :].set(x)

    # bf16 MXU operands on v6e/v7x (also halves resident-weight VMEM + DMA bytes).
    x_pad = x_pad.astype(matmul_dtype)
    wih_t = wih_t.astype(matmul_dtype)
    whh_t = whh_t.astype(matmul_dtype)
    wfc_t = wfc_t.astype(matmul_dtype)

    # TODO(synk): for production H (e.g. 1024+) on v7x (64 MiB VMEM), single-buffer
    # the resident weight specs (pipeline_mode=pl.Buffered(1)) and/or tile the 4H
    # gate axis over an extra "arbitrary" grid dimension.
    out = pl.pallas_call(
        lstm_fused_kernel,
        out_shape=jax.ShapeDtypeStruct((Bp, Op), jnp.float32),
        grid_spec=pltpu.PrefetchScalarGridSpec(
            num_scalar_prefetch=0,
            grid=(Bp // Bt,),                                    # batch tiles
            in_specs=[
                pl.BlockSpec((S, Bt, I), lambda b: (0, b, 0)),   # x: full seq, one batch tile
                pl.BlockSpec((I, 4 * Hp), lambda b: (0, 0)),     # W_ih^T (resident)
                pl.BlockSpec((Hp, 4 * Hp), lambda b: (0, 0)),    # W_hh^T (resident)
                pl.BlockSpec((1, 4 * Hp), lambda b: (0, 0)),     # folded LSTM bias
                pl.BlockSpec((Hp, Op), lambda b: (0, 0)),        # W_fc^T (resident)
                pl.BlockSpec((1, Op), lambda b: (0, 0)),         # fc bias
            ],
            out_specs=pl.BlockSpec((Bt, Op), lambda b: (b, 0)),
            scratch_shapes=[
                pltpu.VMEM((S, Bt, 4 * Hp), jnp.float32),        # precomputed x-gates
            ],
        ),
        compiler_params=pltpu.CompilerParams(
            # recurrence is sequential only in time (inside the kernel);
            # batch tiles are independent -> megacore / 2nd TC on v7x.
            dimension_semantics=("parallel",),
            vmem_limit_bytes=48 * 1024 * 1024,
        ),
    )(x_pad, wih_t, whh_t, b_pad, wfc_t, bfc)

    return out[:B, :O]


def lstm_model_reference(x, params):
    """Pure-JAX reference matching torch.nn.LSTM + Linear semantics."""
    S, B, I = x.shape
    H = params["w_hh"].shape[1]

    def step(carry, x_t):
        h, c = carry
        gates = x_t @ params["w_ih"].T + params["b_ih"] \
                + h @ params["w_hh"].T + params["b_hh"]
        i_g = jax.nn.sigmoid(gates[:, 0 * H:1 * H])
        f_g = jax.nn.sigmoid(gates[:, 1 * H:2 * H])
        g_g = jnp.tanh(gates[:, 2 * H:3 * H])
        o_g = jax.nn.sigmoid(gates[:, 3 * H:4 * H])
        c = f_g * c + i_g * g_g
        h = o_g * jnp.tanh(c)
        return (h, c), h

    h0 = jnp.zeros((B, H), jnp.float32)
    c0 = jnp.zeros((B, H), jnp.float32)
    (hn, _), _ = jax.lax.scan(step, (h0, c0), x)
    return hn @ params["w_fc"].T + params["b_fc"]


def init_params(key, input_size, hidden_size, output_size):
    """Deterministic init mimicking PyTorch's uniform(-1/sqrt(H), 1/sqrt(H))."""
    ks = jax.random.split(key, 6)
    k_lstm = 1.0 / jnp.sqrt(hidden_size)
    k_fc = 1.0 / jnp.sqrt(hidden_size)
    u = lambda k, shape, scale: jax.random.uniform(
        k, shape, jnp.float32, minval=-scale, maxval=scale)
    return {
        "w_ih": u(ks[0], (4 * hidden_size, input_size), k_lstm),
        "w_hh": u(ks[1], (4 * hidden_size, hidden_size), k_lstm),
        "b_ih": u(ks[2], (4 * hidden_size,), k_lstm),
        "b_hh": u(ks[3], (4 * hidden_size,), k_lstm),
        "w_fc": u(ks[4], (output_size, hidden_size), k_fc),
        "b_fc": u(ks[5], (output_size,), k_fc),
    }


if __name__ == "__main__":
    SEQ, BATCH, INPUT, HIDDEN, OUTPUT = 8, 4, 16, 32, 8

    key = jax.random.PRNGKey(0)
    k_x, k_p = jax.random.split(key)
    x = jax.random.normal(k_x, (SEQ, BATCH, INPUT), jnp.float32)
    params = init_params(k_p, INPUT, HIDDEN, OUTPUT)

    ref = lstm_model_reference(x, params)

    # f32 MXU path (matches the f32 reference tightly)
    out = jax.block_until_ready(lstm_model_forward(x, params))
    assert out.shape == (BATCH, OUTPUT)
    assert jnp.allclose(out, ref, rtol=1e-5, atol=1e-5), "f32 mismatch vs reference"

    # bf16 MXU path (v6e/v7x-oriented); state & gate math stay f32 in-kernel
    out_bf16 = jax.block_until_ready(
        lstm_model_forward(x, params, matmul_dtype=jnp.bfloat16))
    assert out_bf16.shape == (BATCH, OUTPUT)
    assert jnp.allclose(out_bf16, ref, rtol=1e-1, atol=1e-1), "bf16 path mismatch"

    print("KERNEL_OK")
</pallas_src>

<mosaic_0001>
module attributes {stable_mosaic.version = 11 : i64} {
  func.func @lstm_fused_kernel(%arg0: i32, %arg1: memref<8x8x16xf32, #tpu.memory_space<vmem>>, %arg2: memref<16x512xf32, #tpu.memory_space<vmem>>, %arg3: memref<128x512xf32, #tpu.memory_space<vmem>>, %arg4: memref<1x512xf32, #tpu.memory_space<vmem>>, %arg5: memref<128x128xf32, #tpu.memory_space<vmem>>, %arg6: memref<1x128xf32, #tpu.memory_space<vmem>>, %arg7: memref<8x128xf32, #tpu.memory_space<vmem>>, %arg8: memref<8x8x512xf32, #tpu.memory_space<vmem>>) attributes {dimension_semantics = [#tpu.dimension_semantics<parallel>], iteration_bounds = array<i64: 1>, scalar_prefetch = 0 : i64, scratch_operands = 1 : i64, tpu.core_type = #tpu.core_type<tc>, window_params = [{transform_indices = @transform_0, window_bounds = array<i64: 8, 8, 16>}, {pipeline_mode = #tpu.pipeline_mode<synchronous>, transform_indices = @transform_1, window_bounds = array<i64: 16, 512>}, {pipeline_mode = #tpu.pipeline_mode<synchronous>, transform_indices = @transform_2, window_bounds = array<i64: 128, 512>}, {pipeline_mode = #tpu.pipeline_mode<synchronous>, transform_indices = @transform_3, window_bounds = array<i64: 1, 512>}, {pipeline_mode = #tpu.pipeline_mode<synchronous>, transform_indices = @transform_4, window_bounds = array<i64: 128, 128>}, {pipeline_mode = #tpu.pipeline_mode<synchronous>, transform_indices = @transform_5, window_bounds = array<i64: 1, 128>}, {transform_indices = @transform_6, window_bounds = array<i64: 8, 128>}]} {
    %c0 = arith.constant 0 : index
    %c0_0 = arith.constant 0 : index
    %c0_1 = arith.constant 0 : index
    %0 = vector.load %arg1[%c0, %c0_0, %c0_1] : memref<8x8x16xf32, #tpu.memory_space<vmem>>, vector<8x8x16xf32>
    %1 = vector.shape_cast %0 : vector<8x8x16xf32> to vector<64x16xf32>
    %c0_2 = arith.constant 0 : index
    %c0_3 = arith.constant 0 : index
    %2 = vector.load %arg2[%c0_2, %c0_3] : memref<16x512xf32, #tpu.memory_space<vmem>>, vector<16x512xf32>
    %cst = arith.constant dense<0.000000e+00> : vector<64x512xf32>
    %3 = tpu.matmul %1, %2, %cst {dimension_numbers = #tpu.dot_dimension_numbers<[1], [0], [0], [1], [0, 0, 1, 1], [], []>} : vector<64x16xf32>, vector<16x512xf32>, vector<64x512xf32> -> vector<64x512xf32>
    %4 = vector.shape_cast %3 : vector<64x512xf32> to vector<8x8x512xf32>
    %c0_4 = arith.constant 0 : index
    %c0_5 = arith.constant 0 : index
    %5 = vector.load %arg4[%c0_4, %c0_5] : memref<1x512xf32, #tpu.memory_space<vmem>>, vector<1x512xf32>
    %6 = vector.shape_cast %5 : vector<1x512xf32> to vector<1x1x512xf32>
    %7 = vector.broadcast %6 : vector<1x1x512xf32> to vector<8x8x512xf32>
    %8 = arith.addf %4, %7 : vector<8x8x512xf32>
    %c0_6 = arith.constant 0 : index
    %c0_7 = arith.constant 0 : index
    %c0_8 = arith.constant 0 : index
    %9 = vector.load %arg8[%c0_6, %c0_7, %c0_8] : memref<8x8x512xf32, #tpu.memory_space<vmem>>, vector<8x8x512xf32>
    tpu.vector_store %arg8[%c0_6, %c0_7, %c0_8], %8 {strides = array<i32>} : memref<8x8x512xf32, #tpu.memory_space<vmem>>, vector<8x8x512xf32>,
    %cst_9 = arith.constant 0.000000e+00 : f32
    %10 = vector.broadcast %cst_9 : f32 to vector<8x128xf32>
    %cst_10 = arith.constant 0.000000e+00 : f32
    %11 = vector.broadcast %cst_10 : f32 to vector<8x128xf32>
    %c0_i32 = arith.constant 0 : i32
    %12 = arith.index_cast %c0_i32 : i32 to index
    %c0_11 = arith.constant 0 : index
    %c0_12 = arith.constant 0 : index
    %13 = vector.load %arg8[%12, %c0_11, %c0_12] : memref<8x8x512xf32, #tpu.memory_space<vmem>>, vector<1x8x512xf32>
    %14 = vector.shape_cast %13 : vector<1x8x512xf32> to vector<8x512xf32>
    %c0_13 = arith.constant 0 : index
    %c0_14 = arith.constant 0 : index
    %15 = vector.load %arg3[%c0_13, %c0_14] : memref<128x512xf32, #tpu.memory_space<vmem>>, vector<128x512xf32>
    %cst_15 = arith.constant dense<0.000000e+00> : vector<8x512xf32>
    %16 = tpu.matmul %10, %15, %cst_15 {dimension_numbers = #tpu.dot_dimension_numbers<[1], [0], [0], [1], [0, 0, 1, 1], [], []>} : vector<8x128xf32>, vector<128x512xf32>, vector<8x512xf32> -> vector<8x512xf32>
    %17 = arith.addf %14, %16 : vector<8x512xf32>
    %18 = vector.extract_strided_slice %17 {offsets = [0, 0], sizes = [8, 128], strides = [1, 1]} : vector<8x512xf32> to vector<8x128xf32>
    %19 = arith.negf %18 : vector<8x128xf32>
    %20 = math.exp %19 : vector<8x128xf32>
    %cst_16 = arith.constant 1.000000e+00 : f32
    %21 = vector.broadcast %cst_16 : f32 to vector<8x128xf32>
    %22 = arith.addf %21, %20 : vector<8x128xf32>
    %23 = arith.divf %21, %22 : vector<8x128xf32>
    %24 = vector.extract_strided_slice %17 {offsets = [0, 128], sizes = [8, 128], strides = [1, 1]} : vector<8x512xf32> to vector<8x128xf32>
    %25 = arith.negf %24 : vector<8x128xf32>
    %26 = math.exp %25 : vector<8x128xf32>
    %cst_17 = arith.constant 1.000000e+00 : f32
    %27 = vector.broadcast %cst_17 : f32 to vector<8x128xf32>
    %28 = arith.addf %27, %26 : vector<8x128xf32>
    %29 = arith.divf %27, %28 : vector<8x128xf32>
    %30 = vector.extract_strided_slice %17 {offsets = [0, 256], sizes = [8, 128], strides = [1, 1]} : vector<8x512xf32> to vector<8x128xf32>
    %31 = math.tanh %30 : vector<8x128xf32>
    %32 = vector.extract_strided_slice %17 {offsets = [0, 384], sizes = [8, 128], strides = [1, 1]} : vector<8x512xf32> to vector<8x128xf32>
    %33 = arith.negf %32 : vector<8x128xf32>
    %34 = math.exp %33 : vector<8x128xf32>
    %cst_18 = arith.constant 1.000000e+00 : f32
    %35 = vector.broadcast %cst_18 : f32 to vector<8x128xf32>
    %36 = arith.addf %35, %34 : vector<8x128xf32>
    %37 = arith.divf %35, %36 : vector<8x128xf32>
    %38 = arith.mulf %29, %11 : vector<8x128xf32>
    %39 = arith.mulf %23, %31 : vector<8x128xf32>
    %40 = arith.addf %38, %39 : vector<8x128xf32>
    %41 = math.tanh %40 : vector<8x128xf32>
    %42 = arith.mulf %37, %41 : vector<8x128xf32>
    %c1_i32 = arith.constant 1 : i32
    %43 = arith.index_cast %c1_i32 : i32 to index
    %c0_19 = arith.constant 0 : index
    %c0_20 = arith.constant 0 : index
    %44 = vector.load %arg8[%43, %c0_19, %c0_20] : memref<8x8x512xf32, #tpu.memory_space<vmem>>, vector<1x8x512xf32>
    %45 = vector.shape_cast %44 : vector<1x8x512xf32> to vector<8x512xf32>
    %c0_21 = arith.constant 0 : index
    %c0_22 = arith.constant 0 : index
    %46 = vector.load %arg3[%c0_21, %c0_22] : memref<128x512xf32, #tpu.memory_space<vmem>>, vector<128x512xf32>
    %cst_23 = arith.constant dense<0.000000e+00> : vector<8x512xf32>
    %47 = tpu.matmul %42, %46, %cst_23 {dimension_numbers = #tpu.dot_dimension_numbers<[1], [0], [0], [1], [0, 0, 1, 1], [], []>} : vector<8x128xf32>, vector<128x512xf32>, vector<8x512xf32> -> vector<8x512xf32>
    %48 = arith.addf %45, %47 : vector<8x512xf32>
    %49 = vector.extract_strided_slice %48 {offsets = [0, 0], sizes = [8, 128], strides = [1, 1]} : vector<8x512xf32> to vector<8x128xf32>
    %50 = arith.negf %49 : vector<8x128xf32>
    %51 = math.exp %50 : vector<8x128xf32>
    %cst_24 = arith.constant 1.000000e+00 : f32
    %52 = vector.broadcast %cst_24 : f32 to vector<8x128xf32>
    %53 = arith.addf %52, %51 : vector<8x128xf32>
    %54 = arith.divf %52, %53 : vector<8x128xf32>
    %55 = vector.extract_strided_slice %48 {offsets = [0, 128], sizes = [8, 128], strides = [1, 1]} : vector<8x512xf32> to vector<8x128xf32>
    %56 = arith.negf %55 : vector<8x128xf32>
    %57 = math.exp %56 : vector<8x128xf32>
    %cst_25 = arith.constant 1.000000e+00 : f32
    %58 = vector.broadcast %cst_25 : f32 to vector<8x128xf32>
    %59 = arith.addf %58, %57 : vector<8x128xf32>
    %60 = arith.divf %58, %59 : vector<8x128xf32>
    %61 = vector.extract_strided_slice %48 {offsets = [0, 256], sizes = [8, 128], strides = [1, 1]} : vector<8x512xf32> to vector<8x128xf32>
    %62 = math.tanh %61 : vector<8x128xf32>
    %63 = vector.extract_strided_slice %48 {offsets = [0, 384], sizes = [8, 128], strides = [1, 1]} : vector<8x512xf32> to vector<8x128xf32>
    %64 = arith.negf %63 : vector<8x128xf32>
    %65 = math.exp %64 : vector<8x128xf32>
    %cst_26 = arith.constant 1.000000e+00 : f32
    %66 = vector.broadcast %cst_26 : f32 to vector<8x128xf32>
    %67 = arith.addf %66, %65 : vector<8x128xf32>
    %68 = arith.divf %66, %67 : vector<8x128xf32>
    %69 = arith.mulf %60, %40 : vector<8x128xf32>
    %70 = arith.mulf %54, %62 : vector<8x128xf32>
    %71 = arith.addf %69, %70 : vector<8x128xf32>
    %72 = math.tanh %71 : vector<8x128xf32>
    %73 = arith.mulf %68, %72 : vector<8x128xf32>
    %c2_i32 = arith.constant 2 : i32
    %74 = arith.index_cast %c2_i32 : i32 to index
    %c0_27 = arith.constant 0 : index
    %c0_28 = arith.constant 0 : index
    %75 = vector.load %arg8[%74, %c0_27, %c0_28] : memref<8x8x512xf32, #tpu.memory_space<vmem>>, vector<1x8x512xf32>
    %76 = vector.shape_cast %75 : vector<1x8x512xf32> to vector<8x512xf32>
    %c0_29 = arith.constant 0 : index
    %c0_30 = arith.constant 0 : index
    %77 = vector.load %arg3[%c0_29, %c0_30] : memref<128x512xf32, #tpu.memory_space<vmem>>, vector<128x512xf32>
    %cst_31 = arith.constant dense<0.000000e+00> : vector<8x512xf32>
    %78 = tpu.matmul %73, %77, %cst_31 {dimension_numbers = #tpu.dot_dimension_numbers<[1], [0], [0], [1], [0, 0, 1, 1], [], []>} : vector<8x128xf32>, vector<128x512xf32>, vector<8x512xf32> -> vector<8x512xf32>
    %79 = arith.addf %76, %78 : vector<8x512xf32>
    %80 = vector.extract_strided_slice %79 {offsets = [0, 0], sizes = [8, 128], strides = [1, 1]} : vector<8x512xf32> to vector<8x128xf32>
    %81 = arith.negf %80 : vector<8x128xf32>
    %82 = math.exp %81 : vector<8x128xf32>
    %cst_32 = arith.constant 1.000000e+00 : f32
    %83 = vector.broadcast %cst_32 : f32 to vector<8x128xf32>
    %84 = arith.addf %83, %82 : vector<8x128xf32>
    %85 = arith.divf %83, %84 : vector<8x128xf32>
    %86 = vector.extract_strided_slice %79 {offsets = [0, 128], sizes = [8, 128], strides = [1, 1]} : vector<8x512xf32> to vector<8x128xf32>
    %87 = arith.negf %86 : vector<8x128xf32>
    %88 = math.exp %87 : vector<8x128xf32>
    %cst_33 = arith.constant 1.000000e+00 : f32
    %89 = vector.broadcast %cst_33 : f32 to vector<8x128xf32>
    %90 = arith.addf %89, %88 : vector<8x128xf32>
    %91 = arith.divf %89, %90 : vector<8x128xf32>
    %92 = vector.extract_strided_slice %79 {offsets = [0, 256], sizes = [8, 128], strides = [1, 1]} : vector<8x512xf32> to vector<8x128xf32>
    %93 = math.tanh %92 : vector<8x128xf32>
    %94 = vector.extract_strided_slice %79 {offsets = [0, 384], sizes = [8, 128], strides = [1, 1]} : vector<8x512xf32> to vector<8x128xf32>
    %95 = arith.negf %94 : vector<8x128xf32>
    %96 = math.exp %95 : vector<8x128xf32>
    %cst_34 = arith.constant 1.000000e+00 : f32
    %97 = vector.broadcast %cst_34 : f32 to vector<8x128xf32>
    %98 = arith.addf %97, %96 : vector<8x128xf32>
    %99 = arith.divf %97, %98 : vector<8x128xf32>
    %100 = arith.mulf %91, %71 : vector<8x128xf32>
    %101 = arith.mulf %85, %93 : vector<8x128xf32>
    %102 = arith.addf %100, %101 : vector<8x128xf32>
    %103 = math.tanh %102 : vector<8x128xf32>
    %104 = arith.mulf %99, %103 : vector<8x128xf32>
    %c3_i32 = arith.constant 3 : i32
    %105 = arith.index_cast %c3_i32 : i32 to index
    %c0_35 = arith.constant 0 : index
    %c0_36 = arith.constant 0 : index
    %106 = vector.load %arg8[%105, %c0_35, %c0_36] : memref<8x8x512xf32, #tpu.memory_space<vmem>>, vector<1x8x512xf32>
    %107 = vector.shape_cast %106 : vector<1x8x512xf32> to vector<8x512xf32>
    %c0_37 = arith.constant 0 : index
    %c0_38 = arith.constant 0 : index
    %108 = vector.load %arg3[%c0_37, %c0_38] : memref<128x512xf32, #tpu.memory_space<vmem>>, vector<128x512xf32>
    %cst_39 = arith.constant dense<0.000000e+00> : vector<8x512xf32>
    %109 = tpu.matmul %104, %108, %cst_39 {dimension_numbers = #tpu.dot_dimension_numbers<[1], [0], [0], [1], [0, 0, 1, 1], [], []>} : vector<8x128xf32>, vector<128x512xf32>, vector<8x512xf32> -> vector<8x512xf32>
    %110 = arith.addf %107, %109 : vector<8x512xf32>
    %111 = vector.extract_strided_slice %110 {offsets = [0, 0], sizes = [8, 128], strides = [1, 1]} : vector<8x512xf32> to vector<8x128xf32>
    %112 = arith.negf %111 : vector<8x128xf32>
    %113 = math.exp %112 : vector<8x128xf32>
    %cst_40 = arith.constant 1.000000e+00 : f32
    %114 = vector.broadcast %cst_40 : f32 to vector<8x128xf32>
    %115 = arith.addf %114, %113 : vector<8x128xf32>
    %116 = arith.divf %114, %115 : vector<8x128xf32>
    %117 = vector.extract_strided_slice %110 {offsets = [0, 128], sizes = [8, 128], strides = [1, 1]} : vector<8x512xf32> to vector<8x128xf32>
    %118 = arith.negf %117 : vector<8x128xf32>
    %119 = math.exp %118 : vector<8x128xf32>
    %cst_41 = arith.constant 1.000000e+00 : f32
    %120 = vector.broadcast %cst_41 : f32 to vector<8x128xf32>
    %121 = arith.addf %120, %119 : vector<8x128xf32>
    %122 = arith.divf %120, %121 : vector<8x128xf32>
    %123 = vector.extract_strided_slice %110 {offsets = [0, 256], sizes = [8, 128], strides = [1, 1]} : vector<8x512xf32> to vector<8x128xf32>
    %124 = math.tanh %123 : vector<8x128xf32>
    %125 = vector.extract_strided_slice %110 {offsets = [0, 384], sizes = [8, 128], strides = [1, 1]} : vector<8x512xf32> to vector<8x128xf32>
    %126 = arith.negf %125 : vector<8x128xf32>
    %127 = math.exp %126 : vector<8x128xf32>
    %cst_42 = arith.constant 1.000000e+00 : f32
    %128 = vector.broadcast %cst_42 : f32 to vector<8x128xf32>
    %129 = arith.addf %128, %127 : vector<8x128xf32>
    %130 = arith.divf %128, %129 : vector<8x128xf32>
    %131 = arith.mulf %122, %102 : vector<8x128xf32>
    %132 = arith.mulf %116, %124 : vector<8x128xf32>
    %133 = arith.addf %131, %132 : vector<8x128xf32>
    %134 = math.tanh %133 : vector<8x128xf32>
    %135 = arith.mulf %130, %134 : vector<8x128xf32>
    %c4_i32 = arith.constant 4 : i32
    %136 = arith.index_cast %c4_i32 : i32 to index
    %c0_43 = arith.constant 0 : index
    %c0_44 = arith.constant 0 : index
    %137 = vector.load %arg8[%136, %c0_43, %c0_44] : memref<8x8x512xf32, #tpu.memory_space<vmem>>, vector<1x8x512xf32>
    %138 = vector.shape_cast %137 : vector<1x8x512xf32> to vector<8x512xf32>
    %c0_45 = arith.constant 0 : index
    %c0_46 = arith.constant 0 : index
    %139 = vector.load %arg3[%c0_45, %c0_46] : memref<128x512xf32, #tpu.memory_space<vmem>>, vector<128x512xf32>
    %cst_47 = arith.constant dense<0.000000e+00> : vector<8x512xf32>
    %140 = tpu.matmul %135, %139, %cst_47 {dimension_numbers = #tpu.dot_dimension_numbers<[1], [0], [0], [1], [0, 0, 1, 1], [], []>} : vector<8x128xf32>, vector<128x512xf32>, vector<8x512xf32> -> vector<8x512xf32>
    %141 = arith.addf %138, %140 : vector<8x512xf32>
    %142 = vector.extract_strided_slice %141 {offsets = [0, 0], sizes = [8, 128], strides = [1, 1]} : vector<8x512xf32> to vector<8x128xf32>
    %143 = arith.negf %142 : vector<8x128xf32>
    %144 = math.exp %143 : vector<8x128xf32>
    %cst_48 = arith.constant 1.000000e+00 : f32
    %145 = vector.broadcast %cst_48 : f32 to vector<8x128xf32>
    %146 = arith.addf %145, %144 : vector<8x128xf32>
    %147 = arith.divf %145, %146 : vector<8x128xf32>
    %148 = vector.extract_strided_slice %141 {offsets = [0, 128], sizes = [8, 128], strides = [1, 1]} : vector<8x512xf32> to vector<8x128xf32>
    %149 = arith.negf %148 : vector<8x128xf32>
    %150 = math.exp %149 : vector<8x128xf32>
    %cst_49 = arith.constant 1.000000e+00 : f32
    %151 = vector.broadcast %cst_49 : f32 to vector<8x128xf32>
    %152 = arith.addf %151, %150 : vector<8x128xf32>
    %153 = arith.divf %151, %152 : vector<8x128xf32>
    %154 = vector.extract_strided_slice %141 {offsets = [0, 256], sizes = [8, 128], strides = [1, 1]} : vector<8x512xf32> to vector<8x128xf32>
    %155 = math.tanh %154 : vector<8x128xf32>
    %156 = vector.extract_strided_slice %141 {offsets = [0, 384], sizes = [8, 128], strides = [1, 1]} : vector<8x512xf32> to vector<8x128xf32>
    %157 = arith.negf %156 : vector<8x128xf32>
    %158 = math.exp %157 : vector<8x128xf32>
    %cst_50 = arith.constant 1.000000e+00 : f32
    %159 = vector.broadcast %cst_50 : f32 to vector<8x128xf32>
    %160 = arith.addf %159, %158 : vector<8x128xf32>
    %161 = arith.divf %159, %160 : vector<8x128xf32>
    %162 = arith.mulf %153, %133 : vector<8x128xf32>
    %163 = arith.mulf %147, %155 : vector<8x128xf32>
    %164 = arith.addf %162, %163 : vector<8x128xf32>
    %165 = math.tanh %164 : vector<8x128xf32>
    %166 = arith.mulf %161, %165 : vector<8x128xf32>
    %c5_i32 = arith.constant 5 : i32
    %167 = arith.index_cast %c5_i32 : i32 to index
    %c0_51 = arith.constant 0 : index
    %c0_52 = arith.constant 0 : index
    %168 = vector.load %arg8[%167, %c0_51, %c0_52] : memref<8x8x512xf32, #tpu.memory_space<vmem>>, vector<1x8x512xf32>
    %169 = vector.shape_cast %168 : vector<1x8x512xf32> to vector<8x512xf32>
    %c0_53 = arith.constant 0 : index
    %c0_54 = arith.constant 0 : index
    %170 = vector.load %arg3[%c0_53, %c0_54] : memref<128x512xf32, #tpu.memory_space<vmem>>, vector<128x512xf32>
    %cst_55 = arith.constant dense<0.000000e+00> : vector<8x512xf32>
    %171 = tpu.matmul %166, %170, %cst_55 {dimension_numbers = #tpu.dot_dimension_numbers<[1], [0], [0], [1], [0, 0, 1, 1], [], []>} : vector<8x128xf32>, vector<128x512xf32>, vector<8x512xf32> -> vector<8x512xf32>
    %172 = arith.addf %169, %171 : vector<8x512xf32>
    %173 = vector.extract_strided_slice %172 {offsets = [0, 0], sizes = [8, 128], strides = [1, 1]} : vector<8x512xf32> to vector<8x128xf32>
    %174 = arith.negf %173 : vector<8x128xf32>
    %175 = math.exp %174 : vector<8x128xf32>
    %cst_56 = arith.constant 1.000000e+00 : f32
    %176 = vector.broadcast %cst_56 : f32 to vector<8x128xf32>
    %177 = arith.addf %176, %175 : vector<8x128xf32>
    %178 = arith.divf %176, %177 : vector<8x128xf32>
    %179 = vector.extract_strided_slice %172 {offsets = [0, 128], sizes = [8, 128], strides = [1, 1]} : vector<8x512xf32> to vector<8x128xf32>
    %180 = arith.negf %179 : vector<8x128xf32>
    %181 = math.exp %180 : vector<8x128xf32>
    %cst_57 = arith.constant 1.000000e+00 : f32
    %182 = vector.broadcast %cst_57 : f32 to vector<8x128xf32>
    %183 = arith.addf %182, %181 : vector<8x128xf32>
    %184 = arith.divf %182, %183 : vector<8x128xf32>
    %185 = vector.extract_strided_slice %172 {offsets = [0, 256], sizes = [8, 128], strides = [1, 1]} : vector<8x512xf32> to vector<8x128xf32>
    %186 = math.tanh %185 : vector<8x128xf32>
    %187 = vector.extract_strided_slice %172 {offsets = [0, 384], sizes = [8, 128], strides = [1, 1]} : vector<8x512xf32> to vector<8x128xf32>
    %188 = arith.negf %187 : vector<8x128xf32>
    %189 = math.exp %188 : vector<8x128xf32>
    %cst_58 = arith.constant 1.000000e+00 : f32
    %190 = vector.broadcast %cst_58 : f32 to vector<8x128xf32>
    %191 = arith.addf %190, %189 : vector<8x128xf32>
    %192 = arith.divf %190, %191 : vector<8x128xf32>
    %193 = arith.mulf %184, %164 : vector<8x128xf32>
    %194 = arith.mulf %178, %186 : vector<8x128xf32>
    %195 = arith.addf %193, %194 : vector<8x128xf32>
    %196 = math.tanh %195 : vector<8x128xf32>
    %197 = arith.mulf %192, %196 : vector<8x128xf32>
    %c6_i32 = arith.constant 6 : i32
    %198 = arith.index_cast %c6_i32 : i32 to index
    %c0_59 = arith.constant 0 : index
    %c0_60 = arith.constant 0 : index
    %199 = vector.load %arg8[%198, %c0_59, %c0_60] : memref<8x8x512xf32, #tpu.memory_space<vmem>>, vector<1x8x512xf32>
    %200 = vector.shape_cast %199 : vector<1x8x512xf32> to vector<8x512xf32>
    %c0_61 = arith.constant 0 : index
    %c0_62 = arith.constant 0 : index
    %201 = vector.load %arg3[%c0_61, %c0_62] : memref<128x512xf32, #tpu.memory_space<vmem>>, vector<128x512xf32>
    %cst_63 = arith.constant dense<0.000000e+00> : vector<8x512xf32>
    %202 = tpu.matmul %197, %201, %cst_63 {dimension_numbers = #tpu.dot_dimension_numbers<[1], [0], [0], [1], [0, 0, 1, 1], [], []>} : vector<8x128xf32>, vector<128x512xf32>, vector<8x512xf32> -> vector<8x512xf32>
    %203 = arith.addf %200, %202 : vector<8x512xf32>
    %204 = vector.extract_strided_slice %203 {offsets = [0, 0], sizes = [8, 128], strides = [1, 1]} : vector<8x512xf32> to vector<8x128xf32>
    %205 = arith.negf %204 : vector<8x128xf32>
    %206 = math.exp %205 : vector<8x128xf32>
    %cst_64 = arith.constant 1.000000e+00 : f32
    %207 = vector.broadcast %cst_64 : f32 to vector<8x128xf32>
    %208 = arith.addf %207, %206 : vector<8x128xf32>
    %209 = arith.divf %207, %208 : vector<8x128xf32>
    %210 = vector.extract_strided_slice %203 {offsets = [0, 128], sizes = [8, 128], strides = [1, 1]} : vector<8x512xf32> to vector<8x128xf32>
    %211 = arith.negf %210 : vector<8x128xf32>
    %212 = math.exp %211 : vector<8x128xf32>
    %cst_65 = arith.constant 1.000000e+00 : f32
    %213 = vector.broadcast %cst_65 : f32 to vector<8x128xf32>
    %214 = arith.addf %213, %212 : vector<8x128xf32>
    %215 = arith.divf %213, %214 : vector<8x128xf32>
    %216 = vector.extract_strided_slice %203 {offsets = [0, 256], sizes = [8, 128], strides = [1, 1]} : vector<8x512xf32> to vector<8x128xf32>
    %217 = math.tanh %216 : vector<8x128xf32>
    %218 = vector.extract_strided_slice %203 {offsets = [0, 384], sizes = [8, 128], strides = [1, 1]} : vector<8x512xf32> to vector<8x128xf32>
    %219 = arith.negf %218 : vector<8x128xf32>
    %220 = math.exp %219 : vector<8x128xf32>
    %cst_66 = arith.constant 1.000000e+00 : f32
    %221 = vector.broadcast %cst_66 : f32 to vector<8x128xf32>
    %222 = arith.addf %221, %220 : vector<8x128xf32>
    %223 = arith.divf %221, %222 : vector<8x128xf32>
    %224 = arith.mulf %215, %195 : vector<8x128xf32>
    %225 = arith.mulf %209, %217 : vector<8x128xf32>
    %226 = arith.addf %224, %225 : vector<8x128xf32>
    %227 = math.tanh %226 : vector<8x128xf32>
    %228 = arith.mulf %223, %227 : vector<8x128xf32>
    %c7_i32 = arith.constant 7 : i32
    %229 = arith.index_cast %c7_i32 : i32 to index
    %c0_67 = arith.constant 0 : index
    %c0_68 = arith.constant 0 : index
    %230 = vector.load %arg8[%229, %c0_67, %c0_68] : memref<8x8x512xf32, #tpu.memory_space<vmem>>, vector<1x8x512xf32>
    %231 = vector.shape_cast %230 : vector<1x8x512xf32> to vector<8x512xf32>
    %c0_69 = arith.constant 0 : index
    %c0_70 = arith.constant 0 : index
    %232 = vector.load %arg3[%c0_69, %c0_70] : memref<128x512xf32, #tpu.memory_space<vmem>>, vector<128x512xf32>
    %cst_71 = arith.constant dense<0.000000e+00> : vector<8x512xf32>
    %233 = tpu.matmul %228, %232, %cst_71 {dimension_numbers = #tpu.dot_dimension_numbers<[1], [0], [0], [1], [0, 0, 1, 1], [], []>} : vector<8x128xf32>, vector<128x512xf32>, vector<8x512xf32> -> vector<8x512xf32>
    %234 = arith.addf %231, %233 : vector<8x512xf32>
    %235 = vector.extract_strided_slice %234 {offsets = [0, 0], sizes = [8, 128], strides = [1, 1]} : vector<8x512xf32> to vector<8x128xf32>
    %236 = arith.negf %235 : vector<8x128xf32>
    %237 = math.exp %236 : vector<8x128xf32>
    %cst_72 = arith.constant 1.000000e+00 : f32
    %238 = vector.broadcast %cst_72 : f32 to vector<8x128xf32>
    %239 = arith.addf %238, %237 : vector<8x128xf32>
    %240 = arith.divf %238, %239 : vector<8x128xf32>
    %241 = vector.extract_strided_slice %234 {offsets = [0, 128], sizes = [8, 128], strides = [1, 1]} : vector<8x512xf32> to vector<8x128xf32>
    %242 = arith.negf %241 : vector<8x128xf32>
    %243 = math.exp %242 : vector<8x128xf32>
    %cst_73 = arith.constant 1.000000e+00 : f32
    %244 = vector.broadcast %cst_73 : f32 to vector<8x128xf32>
    %245 = arith.addf %244, %243 : vector<8x128xf32>
    %246 = arith.divf %244, %245 : vector<8x128xf32>
    %247 = vector.extract_strided_slice %234 {offsets = [0, 256], sizes = [8, 128], strides = [1, 1]} : vector<8x512xf32> to vector<8x128xf32>
    %248 = math.tanh %247 : vector<8x128xf32>
    %249 = vector.extract_strided_slice %234 {offsets = [0, 384], sizes = [8, 128], strides = [1, 1]} : vector<8x512xf32> to vector<8x128xf32>
    %250 = arith.negf %249 : vector<8x128xf32>
    %251 = math.exp %250 : vector<8x128xf32>
    %cst_74 = arith.constant 1.000000e+00 : f32
    %252 = vector.broadcast %cst_74 : f32 to vector<8x128xf32>
    %253 = arith.addf %252, %251 : vector<8x128xf32>
    %254 = arith.divf %252, %253 : vector<8x128xf32>
    %255 = arith.mulf %246, %226 : vector<8x128xf32>
    %256 = arith.mulf %240, %248 : vector<8x128xf32>
    %257 = arith.addf %255, %256 : vector<8x128xf32>
    %258 = math.tanh %257 : vector<8x128xf32>
    %259 = arith.mulf %254, %258 : vector<8x128xf32>
    %c8_i32 = arith.constant 8 : i32
    %c0_75 = arith.constant 0 : index
    %c0_76 = arith.constant 0 : index
    %260 = vector.load %arg5[%c0_75, %c0_76] : memref<128x128xf32, #tpu.memory_space<vmem>>, vector<128x128xf32>
    %cst_77 = arith.constant dense<0.000000e+00> : vector<8x128xf32>
    %261 = tpu.matmul %259, %260, %cst_77 {dimension_numbers = #tpu.dot_dimension_numbers<[1], [0], [0], [1], [0, 0, 1, 1], [], []>} : vector<8x128xf32>, vector<128x128xf32>, vector<8x128xf32> -> vector<8x128xf32>
    %c0_78 = arith.constant 0 : index
    %c0_79 = arith.constant 0 : index
    %262 = vector.load %arg6[%c0_78, %c0_79] : memref<1x128xf32, #tpu.memory_space<vmem>>, vector<1x128xf32>
    %263 = vector.broadcast %262 : vector<1x128xf32> to vector<8x128xf32>
    %264 = arith.addf %261, %263 : vector<8x128xf32>
    %c0_80 = arith.constant 0 : index
    %c0_81 = arith.constant 0 : index
    %265 = vector.load %arg7[%c0_80, %c0_81] : memref<8x128xf32, #tpu.memory_space<vmem>>, vector<8x128xf32>
    tpu.vector_store %arg7[%c0_80, %c0_81], %264 {strides = array<i32>} : memref<8x128xf32, #tpu.memory_space<vmem>>, vector<8x128xf32>,
    return
  }
  func.func @transform_0(%arg0: i32) -> (i32, i32, i32) {
    %c0_i32 = arith.constant 0 : i32
    %c0_i32_0 = arith.constant 0 : i32
    %c0_i32_1 = arith.constant 0 : i32
    return %c0_i32, %arg0, %c0_i32_0 : i32, i32, i32
  }
  func.func @transform_1(%arg0: i32) -> (i32, i32) {
    %c0_i32 = arith.constant 0 : i32
    %c0_i32_0 = arith.constant 0 : i32
    %c0_i32_1 = arith.constant 0 : i32
    return %c0_i32, %c0_i32_0 : i32, i32
  }
  func.func @transform_2(%arg0: i32) -> (i32, i32) {
    %c0_i32 = arith.constant 0 : i32
    %c0_i32_0 = arith.constant 0 : i32
    %c0_i32_1 = arith.constant 0 : i32
    return %c0_i32, %c0_i32_0 : i32, i32
  }
  func.func @transform_3(%arg0: i32) -> (i32, i32) {
    %c0_i32 = arith.constant 0 : i32
    %c0_i32_0 = arith.constant 0 : i32
    %c0_i32_1 = arith.constant 0 : i32
    return %c0_i32, %c0_i32_0 : i32, i32
  }
  func.func @transform_4(%arg0: i32) -> (i32, i32) {
    %c0_i32 = arith.constant 0 : i32
    %c0_i32_0 = arith.constant 0 : i32
    %c0_i32_1 = arith.constant 0 : i32
    return %c0_i32, %c0_i32_0 : i32, i32
  }
  func.func @transform_5(%arg0: i32) -> (i32, i32) {
    %c0_i32 = arith.constant 0 : i32
    %c0_i32_0 = arith.constant 0 : i32
    %c0_i32_1 = arith.constant 0 : i32
    return %c0_i32, %c0_i32_0 : i32, i32
  }
  func.func @transform_6(%arg0: i32) -> (i32, i32) {
    %c0_i32 = arith.constant 0 : i32
    %c0_i32_0 = arith.constant 0 : i32
    return %arg0, %c0_i32 : i32, i32
  }
}

</mosaic_0001>

<bundles_post_ra>
// kernel: tpu_custom_call.1
= control target key start
LH: loop header
LB: loop body
LE: loop exit
PB: predicated region body
PF: predicated region fallthrough
CT: control target
= control target key end

     0   :  { %11 = vsyncpa [#allocation4], 0  ;;  %s3536_s0 = inlined_call_operand.hbm [shape: f32[8,8,16], index: 0, kind: input, shape index: {}]   ;;  %s3537_s1 = inlined_call_operand.hbm [shape: f32[16,512], index: 1, kind: input, shape index: {}]   ;;  %s3538_s2 = inlined_call_operand.hbm [shape: f32[128,512], index: 2, kind: input, shape index: {}]   ;;  %s3539_s3 = inlined_call_operand.vmem [shape: f32[1,512], index: 3, kind: input, shape index: {}]   ;;  %s3540_s4 = inlined_call_operand.hbm [shape: f32[128,128], index: 4, kind: input, shape index: {}]   ;;  %s3541_s5 = inlined_call_operand.vmem [shape: f32[1,128], index: 5, kind: input, shape index: {}]   ;;  %s3542_s6 = inlined_call_operand.hbm [shape: f32[8,128], index: 6, kind: output, shape index: {}]  }
   0x1   :  { %12 = vsyncpa [#allocation7], 0 }
   0x2   :  { %13 = vsyncpa [#allocation10], 0 }
   0x3   :  { %14 = vsyncpa [#allocation5], 0  ;;  %s2965_s21 = smov [#allocation6]   ;;  %s2847_s25 = scalar_lea.hbm %s3537_s1, 1024 }
   0x4   :  { %s32_s22 = sshll.u32 %s2965_s21, 4  ;;  %p2848_p0 = scmp.ne.s32.totalorder %s3537_s1, %s2847_s25  ;;  %s33_s22 = int_to_ptr.vmem [resolvable:$true] %s32_s22 }
   0x5   :  { %p2851_p1 = scmp.lt.u32.totalorder %s2847_s25, %s3537_s1 }
   0x7   :  { %p2853_p2 = pnand %p2851_p1, %p2848_p0 }
   0x9   :  { %2856 = shalt.err (!%p2853_p2)
}
   0xa   :  { %s2857_s30 = scalar_lea.vmem %s33_s22, 1024  ;;  %p2862_p4 = scmp.lt.s32.totalorder %s33_s22, %s33_s22 }
   0xb   :  { %p2858_p3 = scmp.ne.s32.totalorder %s33_s22, %s2857_s30  ;;  %p2863_p5 = scmp.lt.s32.totalorder %s2857_s30, %s2857_s30 }
   0xd   :  { %p2864_p6 = por %p2863_p5, %p2862_p4 }
   0xf   :  { %p2865_p7 = pnand %p2864_p6, %p2858_p3 }
  0x11   :  { %2868 = shalt.err (!%p2865_p7)
}
  0x12   :  { %s2966_s7 = smov 512   ;;  %s2967_s8 = smov 32  }
  0x13   :  { %38 = dma.hbm_to_vmem [thread:$0]  %s3537_s1, 1024, %s33_s22, [#allocation7], %s2966_s7, %s2966_s7, %s2967_s8  }
  0x14   :  { %s2968_s11 = smov [#allocation3]   ;;  %s2869_s15 = scalar_lea.hbm %s3536_s0, 1024 }
  0x15   :  { %s20_s12 = sshll.u32 %s2968_s11, 4  ;;  %p2870_p8 = scmp.ne.s32.totalorder %s3536_s0, %s2869_s15  ;;  %s21_s12 = int_to_ptr.vmem [resolvable:$true] %s20_s12 }
  0x16   :  { %p2873_p9 = scmp.lt.u32.totalorder %s2869_s15, %s3536_s0 }
  0x18   :  { %p2875_p10 = pnand %p2873_p9, %p2870_p8 }
  0x1a   :  { %2878 = shalt.err (!%p2875_p10)
}
  0x1b   :  { %s2879_s20 = scalar_lea.vmem %s21_s12, 1024  ;;  %p2884_p12 = scmp.lt.s32.totalorder %s21_s12, %s21_s12 }
  0x1c   :  { %p2880_p11 = scmp.ne.s32.totalorder %s21_s12, %s2879_s20  ;;  %p2885_p13 = scmp.lt.s32.totalorder %s2879_s20, %s2879_s20 }
  0x1e   :  { %p2886_p0 = por %p2885_p13, %p2884_p12 }
  0x20   :  { %p2887_p1 = pnand %p2886_p0, %p2880_p11 }
  0x22   :  { %2890 = shalt.err (!%p2887_p1)
}
  0x23   :  { %s2969_s1 = smov 128   ;;  %s2970_s21 = smov 8  }
  0x24   :  { %26 = dma.hbm_to_vmem [thread:$0]  %s3536_s0, 1024, %s21_s12, [#allocation4], %s2969_s1, %s2969_s1, %s2970_s21  }
  0x25   :  { %s2971_s24 = smov [#allocation8]   ;;  %s2972_s26 = smov [#allocation9]  }
  0x26   :  { %s44_s25 = sshll.u32 %s2971_s24, 4  ;;  %s58_s27 = sshll.u32 %s2972_s26, 4  ;;  %s45_s25 = int_to_ptr.vmem [resolvable:$true] %s44_s25  ;;  %s3042_s27 = int_to_ptr.vmem [resolvable:$true] %s58_s27 }
  0x27   :  { %s2891_s30 = scalar_lea.hbm %s3538_s2, 8192 }
  0x28   :  { %p2892_p2 = scmp.ne.s32.totalorder %s3538_s2, %s2891_s30  ;;  %p2895_p3 = scmp.lt.u32.totalorder %s2891_s30, %s3538_s2 }
  0x2a   :  { %p2897_p4 = pnand %p2895_p3, %p2892_p2 }
  0x2c   :  { %2900 = shalt.err (!%p2897_p4)
}
  0x2d   :  { %s2901_s0 = scalar_lea.vmem %s45_s25, 8192  ;;  %p2906_p6 = scmp.lt.s32.totalorder %s45_s25, %s45_s25 }
  0x2e   :  { %p2902_p5 = scmp.ne.s32.totalorder %s45_s25, %s2901_s0  ;;  %p2907_p7 = scmp.lt.s32.totalorder %s2901_s0, %s2901_s0 }
  0x30   :  { %p2908_p8 = por %p2907_p7, %p2906_p6 }
  0x32   :  { %p2909_p9 = pnand %p2908_p8, %p2902_p5 }
  0x34   :  { %2912 = shalt.err (!%p2909_p9)
}
  0x35   :  { %50 = dma.hbm_to_vmem [thread:$0]  %s3538_s2, 8192, %s45_s25, [#allocation7], %s2966_s7, %s2966_s7, %s2967_s8  }
  0x36   :  { %s2913_s17 = scalar_lea.hbm %s3540_s4, 2048 }
  0x37   :  { %p2914_p10 = scmp.ne.s32.totalorder %s3540_s4, %s2913_s17  ;;  %p2917_p11 = scmp.lt.u32.totalorder %s2913_s17, %s3540_s4 }
  0x39   :  { %p2919_p12 = pnand %p2917_p11, %p2914_p10 }
  0x3b   :  { %2922 = shalt.err (!%p2919_p12)
}
  0x3c   :  { %s2923_s23 = scalar_lea.vmem %s3042_s27, 2048  ;;  %p2928_p0 = scmp.lt.s32.totalorder %s3042_s27, %s3042_s27 }
  0x3d   :  { %p2924_p13 = scmp.ne.s32.totalorder %s3042_s27, %s2923_s23  ;;  %p2929_p1 = scmp.lt.s32.totalorder %s2923_s23, %s2923_s23 }
  0x3f   :  { %p2930_p2 = por %p2929_p1, %p2928_p0 }
  0x41   :  { %p2931_p3 = pnand %p2930_p2, %p2924_p13 }
  0x43   :  { %2934 = shalt.err (!%p2931_p3)
}
  0x44   :  { %64 = dma.hbm_to_vmem [thread:$0]  %s3540_s4, 2048, %s3042_s27, [#allocation10], %s2969_s1, %s2969_s1, %s2970_s21  }
  0x45   :  { %2957 = dma.done.wait [#allocation4], 1024  }
  0x46   :  { %2958 = vsyncadd [#allocation4], 4294966272 }
  0x47   :  { %2959 = dma.done.wait [#allocation7], 9216  }
  0x48   :  { %2960 = vsyncadd [#allocation7], 4294958080 }
  0x49   :  { %2961 = dma.done.wait [#allocation10], 2048  }
  0x4a   :  { %2962 = vsyncadd [#allocation10], 4294965248  ;;  %v2973_v0 = vmov 0.0   ;;  %v88_v1 = vld [vmem:[#allocation6 + $0x8] sm:$0xff]  ;;  %v90_v3 = vld [vmem:[#allocation6 + $0x18] sm:$0xff]  ;;  %vm95_vm0 = vcmask 130048  }
  0x4b   :  { %184 = vmatprep.mubr.f32.mxu0 %v2973_v0  ;;  %297 = vmatprep.mubr.f32.mxu1 %v2973_v0  ;;  %v92_v2 = vld [vmem:[#allocation6 + $0x28] sm:$0xff]  ;;  %v94_v5 = vld [vmem:[#allocation6 + $0x38] sm:$0xff]  ;;  %v87_v6 = vld [vmem:[#allocation6] sm:$0xff]  ;;  %vm2975_vm1 = vmmov 0   ;;  %s2976_s21 = smov [#allocation11]  }
  0x4c   :  { %v2099_v4 = vpack.c.bf16 %v92_v2, %v88_v1  ;;  %v91_v7 = vld [vmem:[#allocation6 + $0x20] sm:$0xff]  ;;  %v2103_v8 = vpack.c.bf16 %v94_v5, %v90_v3  ;;  %v89_v10 = vld [vmem:[#allocation6 + $0x10] sm:$0xff]  ;;  %v437_v14 = vld [vmem:[#allocation8 + $0x8] sm:$0xff]  ;;  %s1995_s24 = sshll.u32 %s2976_s21, 4  ;;  %s1996_s24 = int_to_ptr.vmem [resolvable:$true] %s1995_s24 }
  0x4d   :  { %v2101_v9 = vpack.c.bf16 %v91_v7, %v87_v6  ;;  %v93_v11 = vld [vmem:[#allocation6 + $0x30] sm:$0xff]  ;;  %v79_v12 = vld [vmem:[#allocation3] sm:$0xff]  ;;  %v441_v15 = vld [vmem:[#allocation8 + $0x28] sm:$0xff]  ;;  %s2935_s25 = scalar_lea.vmem %s1996_s24, 128  ;;  %p2940_p5 = scmp.lt.s32.totalorder %s1996_s24, %s1996_s24 }
  0x4e   :  { %2100 = vmatprep.subr.bf16.mxu0 %v2099_v4  ;;  %v2105_v13 = vpack.c.bf16 %v93_v11, %v89_v10  ;;  %v439_v16 = vld [vmem:[#allocation8 + $0x18] sm:$0xff]  ;;  %2104 = vmatprep.subr.bf16.mxu1 %v2103_v8  ;;  %v3081_v17 = vpack.c.bf16 %v441_v15, %v437_v14  ;;  %v436_v19 = vld [vmem:[#allocation8] sm:$0xff]  ;;  %v438_v23 = vld [vmem:[#allocation8 + $0x10] sm:$0xff]  ;;  %p2936_p4 = scmp.ne.s32.totalorder %s1996_s24, %s2935_s25  ;;  %p2941_p6 = scmp.lt.s32.totalorder %s2935_s25, %s2935_s25 }
  0x4f   :  { %2102 = vmatpush1.bf16.msra.mxu0 %v2101_v9  ;;  %v443_v18 = vld [vmem:[#allocation8 + $0x38] sm:$0xff]  ;;  %v440_v20 = vld [vmem:[#allocation8 + $0x20] sm:$0xff]  ;;  %v442_v24 = vld [vmem:[#allocation8 + $0x30] sm:$0xff] }
  0x50   :  { %2106 = vmatpush1.bf16.msra.mxu1 %v2105_v13  ;;  %v3083_v21 = vpack.c.bf16 %v443_v18, %v439_v16  ;;  %v3085_v22 = vpack.c.bf16 %v440_v20, %v436_v19  ;;  %2108 = vmatprep.subr.bf16.mxu0 %v3081_v17  ;;  %v3088_v25 = vpack.c.bf16 %v442_v24, %v438_v23  ;;  %v445_v26 = vld [vmem:[#allocation8 + $0x48] sm:$0xff]  ;;  %v447_v28 = vld [vmem:[#allocation8 + $0x58] sm:$0xff]  ;;  %v444_v31 = vld [vmem:[#allocation8 + $0x40] sm:$0xff]  ;;  %p2942_p7 = por %p2941_p6, %p2940_p5 }
  0x51   :  { %v449_v27 = vld [vmem:[#allocation8 + $0x68] sm:$0xff]  ;;  %v451_v30 = vld [vmem:[#allocation8 + $0x78] sm:$0xff]  ;;  %v448_v32 = vld [vmem:[#allocation8 + $0x60] sm:$0xff] }
  0x52   :  { %2006 = vmatmul.mubr.msk.f32.vlgmr.msra.gmra.mrb[0].mxu0 %vm95_vm0, %v79_v12  ;;  %2140 = vmatprep.subr.bf16.mxu1 %v3083_v21  ;;  %v3092_v29 = vpack.c.bf16 %v449_v27, %v445_v26  ;;  %v80_v33 = vld [vmem:[#allocation3 + $0x8] sm:$0xff]  ;;  %v3096_v34 = vpack.c.bf16 %v451_v30, %v447_v28  ;;  %v3098_v35 = vpack.c.bf16 %v448_v32, %v444_v31  ;;  %v446_v36 = vld [vmem:[#allocation8 + $0x50] sm:$0xff]  ;;  %v455_v41 = vld [vmem:[#allocation8 + $0x98] sm:$0xff]  ;;  %p2943_p8 = pnand %p2942_p7, %p2936_p4 }
  0x53   :  { %2014 = vmatmul.mubr.msk.f32.vlgmr.msra.gmra.mrb[0].mxu1 %vm95_vm0, %v79_v12  ;;  %2110 = vmatpush1.bf16.msra.mxu0 %v3085_v22  ;;  %v450_v37 = vld [vmem:[#allocation8 + $0x70] sm:$0xff]  ;;  %v453_v39 = vld [vmem:[#allocation8 + $0x88] sm:$0xff]  ;;  %v459_v43 = vld [vmem:[#allocation8 + $0xb8] sm:$0xff] }
  0x54   :  { %2142 = vmatpush1.bf16.msra.mxu1 %v3088_v25  ;;  %190 = vmatprep.mubr.f32.mxu0 %v2973_v0  ;;  %v3102_v38 = vpack.c.bf16 %v450_v37, %v446_v36  ;;  %v457_v40 = vld [vmem:[#allocation8 + $0xa8] sm:$0xff]  ;;  %v452_v44 = vld [vmem:[#allocation8 + $0x80] sm:$0xff]  ;;  %v81_v46 = vld [vmem:[#allocation3 + $0x10] sm:$0xff]  ;;  %v3110_v47 = vpack.c.bf16 %v459_v43, %v455_v41 }
  0x55   :  { %303 = vmatprep.mubr.f32.mxu1 %v2973_v0  ;;  %2112 = vmatprep.subr.bf16.mxu0 %v3092_v29  ;;  %v3106_v42 = vpack.c.bf16 %v457_v40, %v453_v39  ;;  %v456_v45 = vld [vmem:[#allocation8 + $0xa0] sm:$0xff]  ;;  %v454_v48 = vld [vmem:[#allocation8 + $0x90] sm:$0xff]  ;;  %v461_v51 = vld [vmem:[#allocation8 + $0xc8] sm:$0xff] }
  0x56   :  { %2007 = vmatmul.mubr.msk.f32.gmra.mrb[2].mxu0 %vm95_vm0, %v80_v33  ;;  %2144 = vmatprep.subr.bf16.mxu1 %v3096_v34  ;;  %v458_v49 = vld [vmem:[#allocation8 + $0xb0] sm:$0xff]  ;;  %v3114_v50 = vpack.c.bf16 %v456_v45, %v452_v44  ;;  %v465_v52 = vld [vmem:[#allocation8 + $0xe8] sm:$0xff]  ;;  %v463_v53 = vld [vmem:[#allocation8 + $0xd8] sm:$0xff] }
  0x57   :  { %2015 = vmatmul.mubr.msk.f32.gmra.mrb[2].mxu1 %vm95_vm0, %v80_v33  ;;  %2114 = vmatpush1.bf16.msra.mxu0 %v3098_v35  ;;  %v3118_v54 = vpack.c.bf16 %v458_v49, %v454_v48  ;;  %v467_v55 = vld [vmem:[#allocation8 + $0xf8] sm:$0xff]  ;;  %v460_v56 = vld [vmem:[#allocation8 + $0xc0] sm:$0xff]  ;;  %v3122_v58 = vpack.c.bf16 %v465_v52, %v461_v51  ;;  %v462_v59 = vld [vmem:[#allocation8 + $0xd0] sm:$0xff] }
  0x58   :  { %2146 = vmatpush1.bf16.msra.mxu1 %v3102_v38  ;;  %196 = vmatprep.mubr.f32.mxu0 %v2973_v0  ;;  %v464_v57 = vld [vmem:[#allocation8 + $0xe0] sm:$0xff]  ;;  %v466_v60 = vld [vmem:[#allocation8 + $0xf0] sm:$0xff]  ;;  %v3126_v61 = vpack.c.bf16 %v467_v55, %v463_v53  ;;  %v469_v62 = vld [vmem:[#allocation8 + $0x108] sm:$0xff] }
  0x59   :  { %309 = vmatprep.mubr.f32.mxu1 %v2973_v0  ;;  %2116 = vmatprep.subr.bf16.mxu0 %v3106_v42  ;;  %v473_v63 = vld [vmem:[#allocation8 + $0x128] sm:$0xff]  ;;  %v82_v1 = vld [vmem:[#allocation3 + $0x18] sm:$0xff]  ;;  %v3130_v2 = vpack.c.bf16 %v464_v57, %v460_v56  ;;  %v3134_v5 = vpack.c.bf16 %v466_v60, %v462_v59  ;;  %v468_v6 = vld [vmem:[#allocation8 + $0x100] sm:$0xff] }
  0x5a   :  { %2008 = vmatmul.mubr.msk.f32.gmra.mrb[4].mxu0 %vm95_vm0, %v81_v46  ;;  %2148 = vmatprep.subr.bf16.mxu1 %v3110_v47  ;;  %v471_v3 = vld [vmem:[#allocation8 + $0x118] sm:$0xff]  ;;  %v472_v7 = vld [vmem:[#allocation8 + $0x120] sm:$0xff]  ;;  %v3138_v8 = vpack.c.bf16 %v473_v63, %v469_v62  ;;  %v470_v9 = vld [vmem:[#allocation8 + $0x110] sm:$0xff] }
  0x5b   :  { %2016 = vmatmul.mubr.msk.f32.gmra.mrb[4].mxu1 %vm95_vm0, %v81_v46  ;;  %2118 = vmatpush1.bf16.msra.mxu0 %v3114_v50  ;;  %v475_v4 = vld [vmem:[#allocation8 + $0x138] sm:$0xff]  ;;  %v474_v10 = vld [vmem:[#allocation8 + $0x130] sm:$0xff]  ;;  %v477_v12 = vld [vmem:[#allocation8 + $0x148] sm:$0xff]  ;;  %v3146_v15 = vpack.c.bf16 %v472_v7, %v468_v6  ;;  %v348_v7 = vlaneseq }
  0x5c   :  { %2150 = vmatpush1.bf16.msra.mxu1 %v3118_v54  ;;  %202 = vmatprep.mubr.f32.mxu0 %v2973_v0  ;;  %v3142_v11 = vpack.c.bf16 %v475_v4, %v471_v3  ;;  %v481_v13 = vld [vmem:[#allocation8 + $0x168] sm:$0xff]  ;;  %v83_v14 = vld [vmem:[#allocation3 + $0x20] sm:$0xff]  ;;  %v479_v16 = vld [vmem:[#allocation8 + $0x158] sm:$0xff]  ;;  %v3150_v19 = vpack.c.bf16 %v474_v10, %v470_v9 }
  0x5d   :  { %315 = vmatprep.mubr.f32.mxu1 %v2973_v0  ;;  %2120 = vmatprep.subr.bf16.mxu0 %v3122_v58  ;;  %v483_v18 = vld [vmem:[#allocation8 + $0x178] sm:$0xff]  ;;  %v476_v20 = vld [vmem:[#allocation8 + $0x140] sm:$0xff]  ;;  %v3154_v24 = vpack.c.bf16 %v481_v13, %v477_v12  ;;  %v478_v26 = vld [vmem:[#allocation8 + $0x150] sm:$0xff]  ;;  %v349_v9 = vshrl.u32 %v348_v7, 7 }
  0x5e   :  { %2009 = vmatmul.mubr.msk.f32.gmra.mrb[6].mxu0 %vm95_vm0, %v82_v1  ;;  %2152 = vmatprep.subr.bf16.mxu1 %v3126_v61  ;;  %v480_v23 = vld [vmem:[#allocation8 + $0x160] sm:$0xff]  ;;  %v482_v27 = vld [vmem:[#allocation8 + $0x170] sm:$0xff]  ;;  %v3158_v28 = vpack.c.bf16 %v483_v18, %v479_v16  ;;  %v485_v30 = vld [vmem:[#allocation8 + $0x188] sm:$0xff] }
  0x5f   :  { %2017 = vmatmul.mubr.msk.f32.gmra.mrb[6].mxu1 %vm95_vm0, %v82_v1  ;;  %2122 = vmatpush1.bf16.msra.mxu0 %v3130_v2  ;;  %v489_v31 = vld [vmem:[#allocation8 + $0x1a8] sm:$0xff]  ;;  %v3162_v33 = vpack.c.bf16 %v480_v23, %v476_v20  ;;  %v487_v36 = vld [vmem:[#allocation8 + $0x198] sm:$0xff]  ;;  %v3166_v39 = vpack.c.bf16 %v482_v27, %v478_v26  ;;  %v484_v40 = vld [vmem:[#allocation8 + $0x180] sm:$0xff]  ;;  %v350_v10 = vsub.s32 0, %v349_v9  ;;  %v354_v13 = vsub.s32 1, %v349_v9 }
  0x60   :  { %2154 = vmatpush1.bf16.msra.mxu1 %v3134_v5  ;;  %208 = vmatprep.mubr.f32.mxu0 %v2973_v0  ;;  %v84_v32 = vld [vmem:[#allocation3 + $0x28] sm:$0xff]  ;;  %v491_v37 = vld [vmem:[#allocation8 + $0x1b8] sm:$0xff]  ;;  %v488_v41 = vld [vmem:[#allocation8 + $0x1a0] sm:$0xff]  ;;  %v3170_v43 = vpack.c.bf16 %v489_v31, %v485_v30  ;;  %v362_v20 = vsub.s32 3, %v349_v9 }
  0x61   :  { %321 = vmatprep.mubr.f32.mxu1 %v2973_v0  ;;  %2124 = vmatprep.subr.bf16.mxu0 %v3138_v8  ;;  %v486_v44 = vld [vmem:[#allocation8 + $0x190] sm:$0xff]  ;;  %v3174_v46 = vpack.c.bf16 %v491_v37, %v487_v36  ;;  %v493_v48 = vld [vmem:[#allocation8 + $0x1c8] sm:$0xff]  ;;  %v3178_v52 = vpack.c.bf16 %v488_v41, %v484_v40  ;;  %v495_v53 = vld [vmem:[#allocation8 + $0x1d8] sm:$0xff]  ;;  %v358_v40 = vsub.s32 2, %v349_v9 }
  0x62   :  { %2010 = vmatmul.mubr.msk.f32.gmra.mrb[8].mxu0 %vm95_vm0, %v83_v14  ;;  %2156 = vmatprep.subr.bf16.mxu1 %v3142_v11  ;;  %v490_v45 = vld [vmem:[#allocation8 + $0x1b0] sm:$0xff]  ;;  %v497_v49 = vld [vmem:[#allocation8 + $0x1e8] sm:$0xff]  ;;  %v499_v55 = vld [vmem:[#allocation8 + $0x1f8] sm:$0xff] }
  0x63   :  { %2018 = vmatmul.mubr.msk.f32.gmra.mrb[8].mxu1 %vm95_vm0, %v83_v14  ;;  %2126 = vmatpush1.bf16.msra.mxu0 %v3146_v15  ;;  %v85_v51 = vld [vmem:[#allocation3 + $0x30] sm:$0xff]  ;;  %v3182_v56 = vpack.c.bf16 %v490_v45, %v486_v44  ;;  %v492_v57 = vld [vmem:[#allocation8 + $0x1c0] sm:$0xff]  ;;  %v3186_v60 = vpack.c.bf16 %v497_v49, %v493_v48  ;;  %v3190_v1 = vpack.c.bf16 %v499_v55, %v495_v53  ;;  %v86_v3 = vld [vmem:[#allocation3 + $0x38] sm:$0xff] }
  0x64   :  { %2158 = vmatpush1.bf16.msra.mxu1 %v3150_v19  ;;  %214 = vmatprep.mubr.f32.mxu0 %v2973_v0  ;;  %v496_v59 = vld [vmem:[#allocation8 + $0x1e0] sm:$0xff]  ;;  %v494_v62 = vld [vmem:[#allocation8 + $0x1d0] sm:$0xff] }
  0x65   :  { %327 = vmatprep.mubr.f32.mxu1 %v2973_v0  ;;  %2128 = vmatprep.subr.bf16.mxu0 %v3154_v24  ;;  %v498_v63 = vld [vmem:[#allocation8 + $0x1f0] sm:$0xff]  ;;  %v3194_v4 = vpack.c.bf16 %v496_v59, %v492_v57  ;;  %v346_v12 = vld [vmem:[%s3539_s3] sm:$0xf] }
  0x66   :  { %2011 = vmatmul.mubr.msk.f32.gmra.mrb[10].mxu0 %vm95_vm0, %v84_v32  ;;  %2160 = vmatprep.subr.bf16.mxu1 %v3158_v28  ;;  %v3198_v6 = vpack.c.bf16 %v498_v63, %v494_v62  ;;  %v3250_v14 = vrot.slane %v346_v12, %v350_v10  ;;  %v3252_v16 = vrot.slane %v346_v12, %v354_v13 }
  0x67   :  { %2019 = vmatmul.mubr.msk.f32.gmra.mrb[10].mxu1 %vm95_vm0, %v84_v32  ;;  %2130 = vmatpush1.bf16.msra.mxu0 %v3162_v33  ;;  %v3256_v37 = vrot.slane %v346_v12, %v362_v20  ;;  %v3259_v44 = vrot.slane %v346_v12, %v358_v40 }
  0x68   :  { %2162 = vmatpush1.bf16.msra.mxu1 %v3166_v39  ;;  %220 = vmatprep.mubr.f32.mxu0 %v2973_v0 }
  0x69   :  { %333 = vmatprep.mubr.f32.mxu1 %v2973_v0  ;;  %2132 = vmatprep.subr.bf16.mxu0 %v3170_v43 }
  0x6a   :  { %2012 = vmatmul.mubr.msk.f32.gmra.mrb[12].mxu0 %vm95_vm0, %v85_v51  ;;  %2164 = vmatprep.subr.bf16.mxu1 %v3174_v46 }
  0x6b   :  { %2020 = vmatmul.mubr.msk.f32.gmra.mrb[12].mxu1 %vm95_vm0, %v85_v51  ;;  %2134 = vmatpush1.bf16.msra.mxu0 %v3178_v52 }
  0x6c   :  { %2166 = vmatpush1.bf16.msra.mxu1 %v3182_v56  ;;  %226 = vmatprep.mubr.f32.mxu0 %v2973_v0 }
  0x6d   :  { %339 = vmatprep.mubr.f32.mxu1 %v2973_v0  ;;  %2136 = vmatprep.subr.bf16.mxu0 %v3186_v60 }
  0x6e   :  { %2013 = vmatmul.mubr.msk.f32.gmra.mrb[14].mxu0 %vm95_vm0, %v86_v3  ;;  %2168 = vmatprep.subr.bf16.mxu1 %v3190_v1 }
  0x6f   :  { %2021 = vmatmul.mubr.msk.f32.gmra.mrb[14].mxu1 %vm95_vm0, %v86_v3  ;;  %2138 = vmatpush1.bf16.msra.mxu0 %v3194_v4 }
  0x70   :  { %2170 = vmatpush1.bf16.msra.mxu1 %v3198_v6  ;;  %564 = vmatprep.mubr.f32.mxu0 %v2973_v0 }
  0x71   :  { %635 = vmatprep.mubr.f32.mxu1 %v2973_v0  ;;  %2172 = vmatprep.subr.bf16.mxu0 %v3081_v17 }
  0x72   :  { %565 = vmatmul.mubr.f32.vlgmr.msra.gmra.mrb[0].mxu0 %v2973_v0  ;;  %2204 = vmatprep.subr.bf16.mxu1 %v3083_v21 }
  0x73   :  { %636 = vmatmul.mubr.f32.vlgmr.msra.gmra.mrb[0].mxu1 %v2973_v0  ;;  %2174 = vmatpush1.bf16.msra.mxu0 %v3085_v22 }
  0x74   :  { %2206 = vmatpush1.bf16.msra.mxu1 %v3088_v25  ;;  %2176 = vmatprep.subr.bf16.mxu0 %v3092_v29 }
  0x75   :  { %2208 = vmatprep.subr.bf16.mxu1 %v3096_v34  ;;  %739 = vmatprep.mubr.f32.mxu0 %v2973_v0 }
  0x76   :  { %810 = vmatprep.mubr.f32.mxu1 %v2973_v0 }
  0x77   :  { %2178 = vmatpush1.bf16.msra.mxu0 %v3098_v35 }
  0x78   :  { %2210 = vmatpush1.bf16.msra.mxu1 %v3102_v38  ;;  %2180 = vmatprep.subr.bf16.mxu0 %v3106_v42 }
  0x79   :  { %2212 = vmatprep.subr.bf16.mxu1 %v3110_v47 }
  0x7b   :  { %2182 = vmatpush1.bf16.msra.mxu0 %v3114_v50 }
  0x7c   :  { %2214 = vmatpush1.bf16.msra.mxu1 %v3118_v54  ;;  %2184 = vmatprep.subr.bf16.mxu0 %v3122_v58 }
  0x7d   :  { %2216 = vmatprep.subr.bf16.mxu1 %v3126_v61 }
  0x7f   :  { %2186 = vmatpush1.bf16.msra.mxu0 %v3130_v2 }
  0x80   :  { %2218 = vmatpush1.bf16.msra.mxu1 %v3134_v5  ;;  %2188 = vmatprep.subr.bf16.mxu0 %v3138_v8 }
  0x81   :  { %2220 = vmatprep.subr.bf16.mxu1 %v3142_v11 }
  0x83   :  { %2190 = vmatpush1.bf16.msra.mxu0 %v3146_v15 }
  0x84   :  { %2222 = vmatpush1.bf16.msra.mxu1 %v3150_v19  ;;  %2192 = vmatprep.subr.bf16.mxu0 %v3154_v24 }
  0x85   :  { %2224 = vmatprep.subr.bf16.mxu1 %v3158_v28 }
  0x87   :  { %2194 = vmatpush1.bf16.msra.mxu0 %v3162_v33 }
  0x88   :  { %2226 = vmatpush1.bf16.msra.mxu1 %v3166_v39  ;;  %2196 = vmatprep.subr.bf16.mxu0 %v3170_v43 }
  0x89   :  { %2228 = vmatprep.subr.bf16.mxu1 %v3174_v46 }
  0x8b   :  { %2198 = vmatpush1.bf16.msra.mxu0 %v3178_v52 }
  0x8c   :  { %2230 = vmatpush1.bf16.msra.mxu1 %v3182_v56  ;;  %2200 = vmatprep.subr.bf16.mxu0 %v3186_v60 }
  0x8d   :  { %2232 = vmatprep.subr.bf16.mxu1 %v3190_v1 }
  0x8f   :  { %2202 = vmatpush1.bf16.msra.mxu0 %v3194_v4 }
  0x90   :  { %2234 = vmatpush1.bf16.msra.mxu1 %v3198_v6  ;;  %2236 = vmatprep.subr.bf16.mxu0 %v3081_v17 }
  0x91   :  { %2268 = vmatprep.subr.bf16.mxu1 %v3083_v21 }
 0x145   :  { %v566_v18 = vpop.f32.mrb[0].mxu0 }
 0x146   :  { %v2643_v23 = vadd.f32 %v566_v18, %v3250_v14  ;;  %v637_v26 = vpop.f32.mrb[0].mxu1  ;;  %v568_v27 = vpop.f32.mrb[1].mxu0 }
 0x147   :  { %v2644_v30 = vadd.f32 %v568_v27, %v3252_v16  ;;  %v639_v31 = vpop.f32.mrb[1].mxu1  ;;  %v2659_v48 = vadd.f32 %v637_v26, %v3259_v44 }
 0x148   :  { %v2022_v32 = vmul.f32 -1.442695, %v2643_v23  ;;  %v2660_v41 = vadd.f32 %v639_v31, %v3256_v37 }
 0x149   :  { %v2023_v36 = vmul.f32 -1.442695, %v2644_v30 }
 0x14a   :  { %2719 = vpow2.f32 %v2022_v32  ;;  %v2024_v45 = vmul.f32 -1.442695, %v2660_v41 }
 0x14b   :  { %2721 = vpow2.f32 %v2023_v36 }
 0x14c   :  { %2723 = vpow2.f32 %v2024_v45 }
 0x14d   :  { %2725 = vtanh.f32 %v2659_v48 }
 0x154   :  { %v2720_v49 = vpop.eup %2719 }
 0x155   :  { %v2722_v51 = vpop.eup %2721  ;;  %v649_v53 = vadd.f32 1.0, %v2720_v49 }
 0x156   :  { %v655_v55 = vadd.f32 1.0, %v2722_v51  ;;  %v2724_v57 = vpop.eup %2723 }
 0x157   :  { %2727 = vrcp.f32 %v649_v53  ;;  %v2726_v59 = vpop.eup %2725  ;;  %v662_v7 = vadd.f32 1.0, %v2724_v57 }
 0x158   :  { %2729 = vrcp.f32 %v655_v55 }
 0x159   :  { %2731 = vrcp.f32 %v662_v7 }
 0x161   :  { %v2728_v62 = vpop.eup %2727 }
 0x162   :  { %v2730_v63 = vpop.eup %2729  ;;  %v666_v3 = vmul.f32 %v2728_v62, %v2726_v59 }
 0x163   :  { %v665_v9 = vmul.f32 0.0, %v2730_v63  ;;  %v2732_v12 = vpop.eup %2731 }
 0x165   :  { %v3262_v10 = vadd.f32 %v666_v3, %v665_v9 }
 0x167   :  { %2733 = vtanh.f32 %v3262_v10 }
 0x171   :  { %v2734_v13 = vpop.eup %2733 }
 0x172   :  { %v669_v18 = vmul.f32 %v2734_v13, %v2732_v12 }
 0x174   :  { %740 = vmatmul.mubr.f32.vlgmr.msra.gmra.mrb[2].mxu0 %v669_v18  ;;  %811 = vmatmul.mubr.f32.vlgmr.msra.gmra.mrb[2].mxu1 %v669_v18 }
 0x175   :  { %2238 = vmatpush1.bf16.msra.mxu0 %v3085_v22  ;;  %2270 = vmatpush1.bf16.msra.mxu1 %v3088_v25 }
 0x176   :  { %2240 = vmatprep.subr.bf16.mxu0 %v3092_v29  ;;  %2272 = vmatprep.subr.bf16.mxu1 %v3096_v34 }
 0x177   :  { %914 = vmatprep.mubr.f32.mxu0 %v2973_v0  ;;  %985 = vmatprep.mubr.f32.mxu1 %v2973_v0 }
 0x179   :  { %2242 = vmatpush1.bf16.msra.mxu0 %v3098_v35  ;;  %2274 = vmatpush1.bf16.msra.mxu1 %v3102_v38 }
 0x17a   :  { %2244 = vmatprep.subr.bf16.mxu0 %v3106_v42  ;;  %2276 = vmatprep.subr.bf16.mxu1 %v3110_v47 }
 0x17d   :  { %2246 = vmatpush1.bf16.msra.mxu0 %v3114_v50  ;;  %2278 = vmatpush1.bf16.msra.mxu1 %v3118_v54 }
 0x17e   :  { %2248 = vmatprep.subr.bf16.mxu0 %v3122_v58  ;;  %2280 = vmatprep.subr.bf16.mxu1 %v3126_v61 }
 0x181   :  { %2250 = vmatpush1.bf16.msra.mxu0 %v3130_v2  ;;  %2282 = vmatpush1.bf16.msra.mxu1 %v3134_v5 }
 0x182   :  { %2252 = vmatprep.subr.bf16.mxu0 %v3138_v8  ;;  %2284 = vmatprep.subr.bf16.mxu1 %v3142_v11 }
 0x185   :  { %2254 = vmatpush1.bf16.msra.mxu0 %v3146_v15  ;;  %2286 = vmatpush1.bf16.msra.mxu1 %v3150_v19 }
 0x186   :  { %2256 = vmatprep.subr.bf16.mxu0 %v3154_v24  ;;  %2288 = vmatprep.subr.bf16.mxu1 %v3158_v28 }
 0x189   :  { %2258 = vmatpush1.bf16.msra.mxu0 %v3162_v33  ;;  %2290 = vmatpush1.bf16.msra.mxu1 %v3166_v39 }
 0x18a   :  { %2260 = vmatprep.subr.bf16.mxu0 %v3170_v43  ;;  %2292 = vmatprep.subr.bf16.mxu1 %v3174_v46 }
 0x18d   :  { %2262 = vmatpush1.bf16.msra.mxu0 %v3178_v52  ;;  %2294 = vmatpush1.bf16.msra.mxu1 %v3182_v56 }
 0x18e   :  { %2264 = vmatprep.subr.bf16.mxu0 %v3186_v60  ;;  %2296 = vmatprep.subr.bf16.mxu1 %v3190_v1 }
 0x191   :  { %2266 = vmatpush1.bf16.msra.mxu0 %v3194_v4  ;;  %2298 = vmatpush1.bf16.msra.mxu1 %v3198_v6 }
 0x192   :  { %2300 = vmatprep.subr.bf16.mxu0 %v3081_v17  ;;  %2332 = vmatprep.subr.bf16.mxu1 %v3083_v21 }
 0x247   :  { %v741_v20 = vpop.f32.mrb[2].mxu0  ;;  %v812_v23 = vpop.f32.mrb[2].mxu1 }
 0x248   :  { %v2645_v26 = vadd.f32 %v741_v20, %v3250_v14  ;;  %v743_v27 = vpop.f32.mrb[3].mxu0  ;;  %v814_v30 = vpop.f32.mrb[3].mxu1  ;;  %v2661_v45 = vadd.f32 %v812_v23, %v3259_v44 }
 0x249   :  { %v2646_v31 = vadd.f32 %v743_v27, %v3252_v16  ;;  %v2662_v40 = vadd.f32 %v814_v30, %v3256_v37 }
 0x24a   :  { %v2025_v32 = vmul.f32 -1.442695, %v2645_v26 }
 0x24b   :  { %v2026_v36 = vmul.f32 -1.442695, %v2646_v31  ;;  %v2027_v41 = vmul.f32 -1.442695, %v2662_v40 }
 0x24c   :  { %2735 = vpow2.f32 %v2025_v32 }
 0x24d   :  { %2737 = vpow2.f32 %v2026_v36 }
 0x24e   :  { %2739 = vpow2.f32 %v2027_v41 }
 0x24f   :  { %2741 = vtanh.f32 %v2661_v45 }
 0x256   :  { %v2736_v48 = vpop.eup %2735 }
 0x257   :  { %v2738_v49 = vpop.eup %2737  ;;  %v824_v51 = vadd.f32 1.0, %v2736_v48 }
 0x258   :  { %v830_v53 = vadd.f32 1.0, %v2738_v49  ;;  %v2740_v55 = vpop.eup %2739 }
 0x259   :  { %2743 = vrcp.f32 %v824_v51  ;;  %v2742_v57 = vpop.eup %2741  ;;  %v837_v3 = vadd.f32 1.0, %v2740_v55 }
 0x25a   :  { %2745 = vrcp.f32 %v830_v53 }
 0x25b   :  { %2747 = vrcp.f32 %v837_v3 }
 0x263   :  { %v2744_v59 = vpop.eup %2743 }
 0x264   :  { %v2746_v62 = vpop.eup %2745  ;;  %v841_v63 = vmul.f32 %v2744_v59, %v2742_v57 }
 0x265   :  { %v840_v7 = vmul.f32 %v2746_v62, %v3262_v10  ;;  %v2748_v12 = vpop.eup %2747 }
 0x267   :  { %v3304_v9 = vadd.f32 %v841_v63, %v840_v7 }
 0x269   :  { %2749 = vtanh.f32 %v3304_v9 }
 0x273   :  { %v2750_v13 = vpop.eup %2749 }
 0x274   :  { %v844_v18 = vmul.f32 %v2750_v13, %v2748_v12 }
 0x276   :  { %915 = vmatmul.mubr.f32.vlgmr.msra.gmra.mrb[4].mxu0 %v844_v18  ;;  %986 = vmatmul.mubr.f32.vlgmr.msra.gmra.mrb[4].mxu1 %v844_v18 }
 0x277   :  { %2302 = vmatpush1.bf16.msra.mxu0 %v3085_v22  ;;  %2334 = vmatpush1.bf16.msra.mxu1 %v3088_v25 }
 0x278   :  { %2304 = vmatprep.subr.bf16.mxu0 %v3092_v29  ;;  %2336 = vmatprep.subr.bf16.mxu1 %v3096_v34 }
 0x279   :  { %1089 = vmatprep.mubr.f32.mxu0 %v2973_v0  ;;  %1160 = vmatprep.mubr.f32.mxu1 %v2973_v0 }
 0x27b   :  { %2306 = vmatpush1.bf16.msra.mxu0 %v3098_v35  ;;  %2338 = vmatpush1.bf16.msra.mxu1 %v3102_v38 }
 0x27c   :  { %2308 = vmatprep.subr.bf16.mxu0 %v3106_v42  ;;  %2340 = vmatprep.subr.bf16.mxu1 %v3110_v47 }
 0x27f   :  { %2310 = vmatpush1.bf16.msra.mxu0 %v3114_v50  ;;  %2342 = vmatpush1.bf16.msra.mxu1 %v3118_v54 }
 0x280   :  { %2312 = vmatprep.subr.bf16.mxu0 %v3122_v58  ;;  %2344 = vmatprep.subr.bf16.mxu1 %v3126_v61 }
 0x283   :  { %2314 = vmatpush1.bf16.msra.mxu0 %v3130_v2  ;;  %2346 = vmatpush1.bf16.msra.mxu1 %v3134_v5 }
 0x284   :  { %2316 = vmatprep.subr.bf16.mxu0 %v3138_v8  ;;  %2348 = vmatprep.subr.bf16.mxu1 %v3142_v11 }
 0x287   :  { %2318 = vmatpush1.bf16.msra.mxu0 %v3146_v15  ;;  %2350 = vmatpush1.bf16.msra.mxu1 %v3150_v19 }
 0x288   :  { %2320 = vmatprep.subr.bf16.mxu0 %v3154_v24  ;;  %2352 = vmatprep.subr.bf16.mxu1 %v3158_v28 }
 0x28b   :  { %2322 = vmatpush1.bf16.msra.mxu0 %v3162_v33  ;;  %2354 = vmatpush1.bf16.msra.mxu1 %v3166_v39 }
 0x28c   :  { %2324 = vmatprep.subr.bf16.mxu0 %v3170_v43  ;;  %2356 = vmatprep.subr.bf16.mxu1 %v3174_v46 }
 0x28f   :  { %2326 = vmatpush1.bf16.msra.mxu0 %v3178_v52  ;;  %2358 = vmatpush1.bf16.msra.mxu1 %v3182_v56 }
 0x290   :  { %2328 = vmatprep.subr.bf16.mxu0 %v3186_v60  ;;  %2360 = vmatprep.subr.bf16.mxu1 %v3190_v1 }
 0x293   :  { %2330 = vmatpush1.bf16.msra.mxu0 %v3194_v4  ;;  %2362 = vmatpush1.bf16.msra.mxu1 %v3198_v6 }
 0x294   :  { %2364 = vmatprep.subr.bf16.mxu0 %v3081_v17  ;;  %2396 = vmatprep.subr.bf16.mxu1 %v3083_v21 }
 0x349   :  { %v916_v10 = vpop.f32.mrb[4].mxu0  ;;  %v987_v20 = vpop.f32.mrb[4].mxu1 }
 0x34a   :  { %v2647_v23 = vadd.f32 %v916_v10, %v3250_v14  ;;  %v918_v26 = vpop.f32.mrb[5].mxu0  ;;  %v989_v27 = vpop.f32.mrb[5].mxu1  ;;  %v2663_v41 = vadd.f32 %v987_v20, %v3259_v44 }
 0x34b   :  { %v2648_v30 = vadd.f32 %v918_v26, %v3252_v16  ;;  %v2664_v36 = vadd.f32 %v989_v27, %v3256_v37 }
 0x34c   :  { %v2028_v31 = vmul.f32 -1.442695, %v2647_v23 }
 0x34d   :  { %v2029_v32 = vmul.f32 -1.442695, %v2648_v30  ;;  %v2030_v40 = vmul.f32 -1.442695, %v2664_v36 }
 0x34e   :  { %2751 = vpow2.f32 %v2028_v31 }
 0x34f   :  { %2753 = vpow2.f32 %v2029_v32 }
 0x350   :  { %2755 = vpow2.f32 %v2030_v40 }
 0x351   :  { %2757 = vtanh.f32 %v2663_v41 }
 0x358   :  { %v2752_v45 = vpop.eup %2751 }
 0x359   :  { %v2754_v48 = vpop.eup %2753  ;;  %v999_v49 = vadd.f32 1.0, %v2752_v45 }
 0x35a   :  { %v1005_v51 = vadd.f32 1.0, %v2754_v48  ;;  %v2756_v53 = vpop.eup %2755 }
 0x35b   :  { %2759 = vrcp.f32 %v999_v49  ;;  %v2758_v55 = vpop.eup %2757  ;;  %v1012_v63 = vadd.f32 1.0, %v2756_v53 }
 0x35c   :  { %2761 = vrcp.f32 %v1005_v51 }
 0x35d   :  { %2763 = vrcp.f32 %v1012_v63 }
 0x365   :  { %v2760_v57 = vpop.eup %2759 }
 0x366   :  { %v2762_v59 = vpop.eup %2761  ;;  %v1016_v62 = vmul.f32 %v2760_v57, %v2758_v55 }
 0x367   :  { %v1015_v3 = vmul.f32 %v2762_v59, %v3304_v9  ;;  %v2764_v12 = vpop.eup %2763 }
 0x369   :  { %v3346_v7 = vadd.f32 %v1016_v62, %v1015_v3 }
 0x36b   :  { %2765 = vtanh.f32 %v3346_v7 }
 0x375   :  { %v2766_v13 = vpop.eup %2765 }
 0x376   :  { %v1019_v18 = vmul.f32 %v2766_v13, %v2764_v12 }
 0x378   :  { %1090 = vmatmul.mubr.f32.vlgmr.msra.gmra.mrb[6].mxu0 %v1019_v18  ;;  %1161 = vmatmul.mubr.f32.vlgmr.msra.gmra.mrb[6].mxu1 %v1019_v18 }
 0x379   :  { %2366 = vmatpush1.bf16.msra.mxu0 %v3085_v22  ;;  %2398 = vmatpush1.bf16.msra.mxu1 %v3088_v25 }
 0x37a   :  { %2368 = vmatprep.subr.bf16.mxu0 %v3092_v29  ;;  %2400 = vmatprep.subr.bf16.mxu1 %v3096_v34 }
 0x37b   :  { %1264 = vmatprep.mubr.f32.mxu0 %v2973_v0  ;;  %1335 = vmatprep.mubr.f32.mxu1 %v2973_v0 }
 0x37d   :  { %2370 = vmatpush1.bf16.msra.mxu0 %v3098_v35  ;;  %2402 = vmatpush1.bf16.msra.mxu1 %v3102_v38 }
 0x37e   :  { %2372 = vmatprep.subr.bf16.mxu0 %v3106_v42  ;;  %2404 = vmatprep.subr.bf16.mxu1 %v3110_v47 }
 0x381   :  { %2374 = vmatpush1.bf16.msra.mxu0 %v3114_v50  ;;  %2406 = vmatpush1.bf16.msra.mxu1 %v3118_v54 }
 0x382   :  { %2376 = vmatprep.subr.bf16.mxu0 %v3122_v58  ;;  %2408 = vmatprep.subr.bf16.mxu1 %v3126_v61 }
 0x385   :  { %2378 = vmatpush1.bf16.msra.mxu0 %v3130_v2  ;;  %2410 = vmatpush1.bf16.msra.mxu1 %v3134_v5 }
 0x386   :  { %2380 = vmatprep.subr.bf16.mxu0 %v3138_v8  ;;  %2412 = vmatprep.subr.bf16.mxu1 %v3142_v11 }
 0x389   :  { %2382 = vmatpush1.bf16.msra.mxu0 %v3146_v15  ;;  %2414 = vmatpush1.bf16.msra.mxu1 %v3150_v19 }
 0x38a   :  { %2384 = vmatprep.subr.bf16.mxu0 %v3154_v24  ;;  %2416 = vmatprep.subr.bf16.mxu1 %v3158_v28 }
 0x38d   :  { %2386 = vmatpush1.bf16.msra.mxu0 %v3162_v33  ;;  %2418 = vmatpush1.bf16.msra.mxu1 %v3166_v39 }
 0x38e   :  { %2388 = vmatprep.subr.bf16.mxu0 %v3170_v43  ;;  %2420 = vmatprep.subr.bf16.mxu1 %v3174_v46 }
 0x391   :  { %2390 = vmatpush1.bf16.msra.mxu0 %v3178_v52  ;;  %2422 = vmatpush1.bf16.msra.mxu1 %v3182_v56 }
 0x392   :  { %2392 = vmatprep.subr.bf16.mxu0 %v3186_v60  ;;  %2424 = vmatprep.subr.bf16.mxu1 %v3190_v1 }
 0x395   :  { %2394 = vmatpush1.bf16.msra.mxu0 %v3194_v4  ;;  %2426 = vmatpush1.bf16.msra.mxu1 %v3198_v6 }
 0x396   :  { %2428 = vmatprep.subr.bf16.mxu0 %v3081_v17  ;;  %2460 = vmatprep.subr.bf16.mxu1 %v3083_v21 }
 0x44b   :  { %v1091_v9 = vpop.f32.mrb[6].mxu0  ;;  %v1162_v10 = vpop.f32.mrb[6].mxu1 }
 0x44c   :  { %v2649_v20 = vadd.f32 %v1091_v9, %v3250_v14  ;;  %v1093_v23 = vpop.f32.mrb[7].mxu0  ;;  %v1164_v26 = vpop.f32.mrb[7].mxu1  ;;  %v2665_v40 = vadd.f32 %v1162_v10, %v3259_v44 }
 0x44d   :  { %v2650_v27 = vadd.f32 %v1093_v23, %v3252_v16  ;;  %v2666_v32 = vadd.f32 %v1164_v26, %v3256_v37 }
 0x44e   :  { %v2031_v30 = vmul.f32 -1.442695, %v2649_v20 }
 0x44f   :  { %v2032_v31 = vmul.f32 -1.442695, %v2650_v27  ;;  %v2033_v36 = vmul.f32 -1.442695, %v2666_v32 }
 0x450   :  { %2767 = vpow2.f32 %v2031_v30 }
 0x451   :  { %2769 = vpow2.f32 %v2032_v31 }
 0x452   :  { %2771 = vpow2.f32 %v2033_v36 }
 0x453   :  { %2773 = vtanh.f32 %v2665_v40 }
 0x45a   :  { %v2768_v41 = vpop.eup %2767 }
 0x45b   :  { %v2770_v45 = vpop.eup %2769  ;;  %v1174_v48 = vadd.f32 1.0, %v2768_v41 }
 0x45c   :  { %v1180_v49 = vadd.f32 1.0, %v2770_v45  ;;  %v2772_v51 = vpop.eup %2771 }
 0x45d   :  { %2775 = vrcp.f32 %v1174_v48  ;;  %v2774_v53 = vpop.eup %2773  ;;  %v1187_v62 = vadd.f32 1.0, %v2772_v51 }
 0x45e   :  { %2777 = vrcp.f32 %v1180_v49 }
 0x45f   :  { %2779 = vrcp.f32 %v1187_v62 }
 0x467   :  { %v2776_v55 = vpop.eup %2775 }
 0x468   :  { %v2778_v57 = vpop.eup %2777  ;;  %v1191_v59 = vmul.f32 %v2776_v55, %v2774_v53 }
 0x469   :  { %v1190_v63 = vmul.f32 %v2778_v57, %v3346_v7  ;;  %v2780_v12 = vpop.eup %2779 }
 0x46b   :  { %v3388_v3 = vadd.f32 %v1191_v59, %v1190_v63 }
 0x46d   :  { %2781 = vtanh.f32 %v3388_v3 }
 0x477   :  { %v2782_v13 = vpop.eup %2781 }
 0x478   :  { %v1194_v18 = vmul.f32 %v2782_v13, %v2780_v12 }
 0x47a   :  { %1265 = vmatmul.mubr.f32.vlgmr.msra.gmra.mrb[8].mxu0 %v1194_v18  ;;  %1336 = vmatmul.mubr.f32.vlgmr.msra.gmra.mrb[8].mxu1 %v1194_v18 }
 0x47b   :  { %2430 = vmatpush1.bf16.msra.mxu0 %v3085_v22  ;;  %2462 = vmatpush1.bf16.msra.mxu1 %v3088_v25 }
 0x47c   :  { %2432 = vmatprep.subr.bf16.mxu0 %v3092_v29  ;;  %2464 = vmatprep.subr.bf16.mxu1 %v3096_v34 }
 0x47d   :  { %1439 = vmatprep.mubr.f32.mxu0 %v2973_v0  ;;  %1510 = vmatprep.mubr.f32.mxu1 %v2973_v0 }
 0x47f   :  { %2434 = vmatpush1.bf16.msra.mxu0 %v3098_v35  ;;  %2466 = vmatpush1.bf16.msra.mxu1 %v3102_v38 }
 0x480   :  { %2436 = vmatprep.subr.bf16.mxu0 %v3106_v42  ;;  %2468 = vmatprep.subr.bf16.mxu1 %v3110_v47 }
 0x483   :  { %2438 = vmatpush1.bf16.msra.mxu0 %v3114_v50  ;;  %2470 = vmatpush1.bf16.msra.mxu1 %v3118_v54 }
 0x484   :  { %2440 = vmatprep.subr.bf16.mxu0 %v3122_v58  ;;  %2472 = vmatprep.subr.bf16.mxu1 %v3126_v61 }
 0x487   :  { %2442 = vmatpush1.bf16.msra.mxu0 %v3130_v2  ;;  %2474 = vmatpush1.bf16.msra.mxu1 %v3134_v5 }
 0x488   :  { %2444 = vmatprep.subr.bf16.mxu0 %v3138_v8  ;;  %2476 = vmatprep.subr.bf16.mxu1 %v3142_v11 }
 0x48b   :  { %2446 = vmatpush1.bf16.msra.mxu0 %v3146_v15  ;;  %2478 = vmatpush1.bf16.msra.mxu1 %v3150_v19 }
 0x48c   :  { %2448 = vmatprep.subr.bf16.mxu0 %v3154_v24  ;;  %2480 = vmatprep.subr.bf16.mxu1 %v3158_v28 }
 0x48f   :  { %2450 = vmatpush1.bf16.msra.mxu0 %v3162_v33  ;;  %2482 = vmatpush1.bf16.msra.mxu1 %v3166_v39 }
 0x490   :  { %2452 = vmatprep.subr.bf16.mxu0 %v3170_v43  ;;  %2484 = vmatprep.subr.bf16.mxu1 %v3174_v46 }
 0x493   :  { %2454 = vmatpush1.bf16.msra.mxu0 %v3178_v52  ;;  %2486 = vmatpush1.bf16.msra.mxu1 %v3182_v56 }
 0x494   :  { %2456 = vmatprep.subr.bf16.mxu0 %v3186_v60  ;;  %2488 = vmatprep.subr.bf16.mxu1 %v3190_v1 }
 0x497   :  { %2458 = vmatpush1.bf16.msra.mxu0 %v3194_v4  ;;  %2490 = vmatpush1.bf16.msra.mxu1 %v3198_v6 }
 0x498   :  { %2492 = vmatprep.subr.bf16.mxu0 %v3081_v17  ;;  %2524 = vmatprep.subr.bf16.mxu1 %v3083_v21 }
 0x54d   :  { %v1266_v7 = vpop.f32.mrb[8].mxu0  ;;  %v1337_v9 = vpop.f32.mrb[8].mxu1 }
 0x54e   :  { %v2651_v10 = vadd.f32 %v1266_v7, %v3250_v14  ;;  %v1268_v20 = vpop.f32.mrb[9].mxu0  ;;  %v1339_v23 = vpop.f32.mrb[9].mxu1  ;;  %v2667_v36 = vadd.f32 %v1337_v9, %v3259_v44 }
 0x54f   :  { %v2652_v26 = vadd.f32 %v1268_v20, %v3252_v16  ;;  %v2668_v31 = vadd.f32 %v1339_v23, %v3256_v37 }
 0x550   :  { %v2034_v27 = vmul.f32 -1.442695, %v2651_v10 }
 0x551   :  { %v2035_v30 = vmul.f32 -1.442695, %v2652_v26  ;;  %v2036_v32 = vmul.f32 -1.442695, %v2668_v31 }
 0x552   :  { %2783 = vpow2.f32 %v2034_v27 }
 0x553   :  { %2785 = vpow2.f32 %v2035_v30 }
 0x554   :  { %2787 = vpow2.f32 %v2036_v32 }
 0x555   :  { %2789 = vtanh.f32 %v2667_v36 }
 0x55c   :  { %v2784_v40 = vpop.eup %2783 }
 0x55d   :  { %v2786_v41 = vpop.eup %2785  ;;  %v1349_v45 = vadd.f32 1.0, %v2784_v40 }
 0x55e   :  { %v1355_v48 = vadd.f32 1.0, %v2786_v41  ;;  %v2788_v49 = vpop.eup %2787 }
 0x55f   :  { %2791 = vrcp.f32 %v1349_v45  ;;  %v2790_v51 = vpop.eup %2789  ;;  %v1362_v59 = vadd.f32 1.0, %v2788_v49 }
 0x560   :  { %2793 = vrcp.f32 %v1355_v48 }
 0x561   :  { %2795 = vrcp.f32 %v1362_v59 }
 0x569   :  { %v2792_v53 = vpop.eup %2791 }
 0x56a   :  { %v2794_v55 = vpop.eup %2793  ;;  %v1366_v57 = vmul.f32 %v2792_v53, %v2790_v51 }
 0x56b   :  { %v1365_v62 = vmul.f32 %v2794_v55, %v3388_v3  ;;  %v2796_v12 = vpop.eup %2795 }
 0x56d   :  { %v3430_v63 = vadd.f32 %v1366_v57, %v1365_v62 }
 0x56f   :  { %2797 = vtanh.f32 %v3430_v63 }
 0x579   :  { %v2798_v13 = vpop.eup %2797 }
 0x57a   :  { %v1369_v18 = vmul.f32 %v2798_v13, %v2796_v12  ;;  %v1898_v13 = vld [vmem:[#allocation9 + $0x18] sm:$0xff] }
 0x57c   :  { %1440 = vmatmul.mubr.f32.vlgmr.msra.gmra.mrb[10].mxu0 %v1369_v18  ;;  %1511 = vmatmul.mubr.f32.vlgmr.msra.gmra.mrb[10].mxu1 %v1369_v18 }
 0x57d   :  { %2494 = vmatpush1.bf16.msra.mxu0 %v3085_v22  ;;  %2526 = vmatpush1.bf16.msra.mxu1 %v3088_v25 }
 0x57e   :  { %2496 = vmatprep.subr.bf16.mxu0 %v3092_v29  ;;  %2528 = vmatprep.subr.bf16.mxu1 %v3096_v34 }
 0x57f   :  { %1614 = vmatprep.mubr.f32.mxu0 %v2973_v0  ;;  %1685 = vmatprep.mubr.f32.mxu1 %v2973_v0 }
 0x581   :  { %2498 = vmatpush1.bf16.msra.mxu0 %v3098_v35  ;;  %2530 = vmatpush1.bf16.msra.mxu1 %v3102_v38 }
 0x582   :  { %2500 = vmatprep.subr.bf16.mxu0 %v3106_v42  ;;  %2532 = vmatprep.subr.bf16.mxu1 %v3110_v47 }
 0x585   :  { %2502 = vmatpush1.bf16.msra.mxu0 %v3114_v50  ;;  %2534 = vmatpush1.bf16.msra.mxu1 %v3118_v54 }
 0x586   :  { %2504 = vmatprep.subr.bf16.mxu0 %v3122_v58  ;;  %2536 = vmatprep.subr.bf16.mxu1 %v3126_v61 }
 0x589   :  { %2506 = vmatpush1.bf16.msra.mxu0 %v3130_v2  ;;  %2538 = vmatpush1.bf16.msra.mxu1 %v3134_v5 }
 0x58a   :  { %2508 = vmatprep.subr.bf16.mxu0 %v3138_v8  ;;  %2540 = vmatprep.subr.bf16.mxu1 %v3142_v11 }
 0x58d   :  { %2510 = vmatpush1.bf16.msra.mxu0 %v3146_v15  ;;  %2542 = vmatpush1.bf16.msra.mxu1 %v3150_v19 }
 0x58e   :  { %2512 = vmatprep.subr.bf16.mxu0 %v3154_v24  ;;  %2544 = vmatprep.subr.bf16.mxu1 %v3158_v28 }
 0x591   :  { %2514 = vmatpush1.bf16.msra.mxu0 %v3162_v33  ;;  %2546 = vmatpush1.bf16.msra.mxu1 %v3166_v39 }
 0x592   :  { %2516 = vmatprep.subr.bf16.mxu0 %v3170_v43  ;;  %2548 = vmatprep.subr.bf16.mxu1 %v3174_v46 }
 0x595   :  { %2518 = vmatpush1.bf16.msra.mxu0 %v3178_v52  ;;  %2550 = vmatpush1.bf16.msra.mxu1 %v3182_v56 }
 0x596   :  { %2520 = vmatprep.subr.bf16.mxu0 %v3186_v60  ;;  %2552 = vmatprep.subr.bf16.mxu1 %v3190_v1 }
 0x599   :  { %2522 = vmatpush1.bf16.msra.mxu0 %v3194_v4  ;;  %2554 = vmatpush1.bf16.msra.mxu1 %v3198_v6 }
 0x59a   :  { %2556 = vmatprep.subr.bf16.mxu0 %v3081_v17  ;;  %2588 = vmatprep.subr.bf16.mxu1 %v3083_v21 }
 0x64f   :  { %v1441_v3 = vpop.f32.mrb[10].mxu0  ;;  %v1512_v7 = vpop.f32.mrb[10].mxu1 }
 0x650   :  { %v2653_v9 = vadd.f32 %v1441_v3, %v3250_v14  ;;  %v1443_v10 = vpop.f32.mrb[11].mxu0  ;;  %v1514_v20 = vpop.f32.mrb[11].mxu1  ;;  %v2669_v32 = vadd.f32 %v1512_v7, %v3259_v44  ;;  %v1899_v3 = vld [vmem:[#allocation9 + $0x20] sm:$0xff]  ;;  %v1900_v7 = vld [vmem:[#allocation9 + $0x28] sm:$0xff] }
 0x651   :  { %v2654_v23 = vadd.f32 %v1443_v10, %v3252_v16  ;;  %v2670_v30 = vadd.f32 %v1514_v20, %v3256_v37  ;;  %v1901_v10 = vld [vmem:[#allocation9 + $0x30] sm:$0xff]  ;;  %v1902_v20 = vld [vmem:[#allocation9 + $0x38] sm:$0xff] }
 0x652   :  { %v2037_v26 = vmul.f32 -1.442695, %v2653_v9  ;;  %v2626_v9 = vpack.c.bf16 %v1900_v7, %v1899_v3 }
 0x653   :  { %v2038_v27 = vmul.f32 -1.442695, %v2654_v23  ;;  %v2039_v31 = vmul.f32 -1.442695, %v2670_v30  ;;  %v2629_v23 = vpack.c.bf16 %v1902_v20, %v1901_v10 }
 0x654   :  { %2799 = vpow2.f32 %v2037_v26  ;;  %v1903_v26 = vld [vmem:[#allocation9 + $0x40] sm:$0xff] }
 0x655   :  { %2801 = vpow2.f32 %v2038_v27  ;;  %v1904_v27 = vld [vmem:[#allocation9 + $0x48] sm:$0xff] }
 0x656   :  { %2803 = vpow2.f32 %v2039_v31  ;;  %v2632_v30 = vpack.c.bf16 %v1904_v27, %v1903_v26  ;;  %v1905_v31 = vld [vmem:[#allocation9 + $0x50] sm:$0xff] }
 0x657   :  { %2805 = vtanh.f32 %v2669_v32  ;;  %v1906_v32 = vld [vmem:[#allocation9 + $0x58] sm:$0xff] }
 0x65e   :  { %v2800_v17 = vpop.eup %2799 }
 0x65f   :  { %v2802_v36 = vpop.eup %2801  ;;  %v1524_v21 = vadd.f32 1.0, %v2800_v17  ;;  %v1907_v17 = vld [vmem:[#allocation9 + $0x60] sm:$0xff] }
 0x660   :  { %v1530_v40 = vadd.f32 1.0, %v2802_v36  ;;  %v2804_v41 = vpop.eup %2803  ;;  %v2635_v36 = vpack.c.bf16 %v1906_v32, %v1905_v31 }
 0x661   :  { %2807 = vrcp.f32 %v1524_v21  ;;  %v2806_v45 = vpop.eup %2805  ;;  %v1537_v53 = vadd.f32 1.0, %v2804_v41  ;;  %v1908_v21 = vld [vmem:[#allocation9 + $0x68] sm:$0xff]  ;;  %v1909_v41 = vld [vmem:[#allocation9 + $0x70] sm:$0xff] }
 0x662   :  { %2809 = vrcp.f32 %v1530_v40  ;;  %v2638_v40 = vpack.c.bf16 %v1908_v21, %v1907_v17 }
 0x663   :  { %2811 = vrcp.f32 %v1537_v53 }
 0x66b   :  { %v2808_v48 = vpop.eup %2807 }
 0x66c   :  { %v2810_v49 = vpop.eup %2809  ;;  %v1541_v51 = vmul.f32 %v2808_v48, %v2806_v45  ;;  %v1910_v45 = vld [vmem:[#allocation9 + $0x78] sm:$0xff] }
 0x66d   :  { %v1540_v55 = vmul.f32 %v2810_v49, %v3430_v63  ;;  %v2812_v59 = vpop.eup %2811  ;;  %v1897_v63 = vld [vmem:[#allocation9 + $0x10] sm:$0xff]  ;;  %v2641_v48 = vpack.c.bf16 %v1910_v45, %v1909_v41 }
 0x66e   :  { %v2623_v18 = vpack.c.bf16 %v1898_v13, %v1897_v63 }
 0x66f   :  { %v3472_v57 = vadd.f32 %v1541_v51, %v1540_v55 }
 0x671   :  { %2813 = vtanh.f32 %v3472_v57 }
 0x67b   :  { %v2814_v62 = vpop.eup %2813 }
 0x67c   :  { %v1544_v12 = vmul.f32 %v2814_v62, %v2812_v59 }
 0x67e   :  { %1615 = vmatmul.mubr.f32.vlgmr.msra.gmra.mrb[12].mxu0 %v1544_v12  ;;  %1686 = vmatmul.mubr.f32.vlgmr.msra.gmra.mrb[12].mxu1 %v1544_v12 }
 0x67f   :  { %2558 = vmatpush1.bf16.msra.mxu0 %v3085_v22  ;;  %2590 = vmatpush1.bf16.msra.mxu1 %v3088_v25 }
 0x680   :  { %2560 = vmatprep.subr.bf16.mxu0 %v3092_v29  ;;  %2592 = vmatprep.subr.bf16.mxu1 %v3096_v34 }
 0x681   :  { %1789 = vmatprep.mubr.f32.mxu0 %v2973_v0  ;;  %1860 = vmatprep.mubr.f32.mxu1 %v2973_v0 }
 0x683   :  { %2562 = vmatpush1.bf16.msra.mxu0 %v3098_v35  ;;  %2594 = vmatpush1.bf16.msra.mxu1 %v3102_v38 }
 0x684   :  { %2564 = vmatprep.subr.bf16.mxu0 %v3106_v42  ;;  %2596 = vmatprep.subr.bf16.mxu1 %v3110_v47 }
 0x687   :  { %2566 = vmatpush1.bf16.msra.mxu0 %v3114_v50  ;;  %2598 = vmatpush1.bf16.msra.mxu1 %v3118_v54 }
 0x688   :  { %2568 = vmatprep.subr.bf16.mxu0 %v3122_v58  ;;  %2600 = vmatprep.subr.bf16.mxu1 %v3126_v61 }
 0x68b   :  { %2570 = vmatpush1.bf16.msra.mxu0 %v3130_v2  ;;  %2602 = vmatpush1.bf16.msra.mxu1 %v3134_v5 }
 0x68c   :  { %2572 = vmatprep.subr.bf16.mxu0 %v3138_v8  ;;  %2604 = vmatprep.subr.bf16.mxu1 %v3142_v11 }
 0x68f   :  { %2574 = vmatpush1.bf16.msra.mxu0 %v3146_v15  ;;  %2606 = vmatpush1.bf16.msra.mxu1 %v3150_v19 }
 0x690   :  { %2576 = vmatprep.subr.bf16.mxu0 %v3154_v24  ;;  %2608 = vmatprep.subr.bf16.mxu1 %v3158_v28 }
 0x693   :  { %2578 = vmatpush1.bf16.msra.mxu0 %v3162_v33  ;;  %2610 = vmatpush1.bf16.msra.mxu1 %v3166_v39 }
 0x694   :  { %2580 = vmatprep.subr.bf16.mxu0 %v3170_v43  ;;  %2612 = vmatprep.subr.bf16.mxu1 %v3174_v46 }
 0x697   :  { %2582 = vmatpush1.bf16.msra.mxu0 %v3178_v52  ;;  %2614 = vmatpush1.bf16.msra.mxu1 %v3182_v56 }
 0x698   :  { %2584 = vmatprep.subr.bf16.mxu0 %v3186_v60  ;;  %2616 = vmatprep.subr.bf16.mxu1 %v3190_v1  ;;  %v1895_v60 = vld [vmem:[#allocation9] sm:$0xff]  ;;  %v1896_v1 = vld [vmem:[#allocation9 + $0x8] sm:$0xff] }
 0x69b   :  { %2586 = vmatpush1.bf16.msra.mxu0 %v3194_v4  ;;  %2618 = vmatpush1.bf16.msra.mxu1 %v3198_v6  ;;  %v2620_v4 = vpack.c.bf16 %v1896_v1, %v1895_v60  ;;  %v2974_v6 = vmov 0.0|0.0  }
 0x69c   :  { %2619 = vmatprep.subr.bf16.mxu0 %v2974_v6 }
 0x751   :  { %v1616_v22 = vpop.f32.mrb[12].mxu0  ;;  %v1687_v25 = vpop.f32.mrb[12].mxu1 }
 0x752   :  { %v2655_v29 = vadd.f32 %v1616_v22, %v3250_v14  ;;  %v1618_v34 = vpop.f32.mrb[13].mxu0  ;;  %v1689_v35 = vpop.f32.mrb[13].mxu1  ;;  %v2671_v58 = vadd.f32 %v1687_v25, %v3259_v44 }
 0x753   :  { %v2656_v38 = vadd.f32 %v1618_v34, %v3252_v16  ;;  %v2672_v50 = vadd.f32 %v1689_v35, %v3256_v37 }
 0x754   :  { %v2040_v42 = vmul.f32 -1.442695, %v2655_v29 }
 0x755   :  { %v2041_v47 = vmul.f32 -1.442695, %v2656_v38  ;;  %v2042_v54 = vmul.f32 -1.442695, %v2672_v50 }
 0x756   :  { %2815 = vpow2.f32 %v2040_v42 }
 0x757   :  { %2817 = vpow2.f32 %v2041_v47 }
 0x758   :  { %2819 = vpow2.f32 %v2042_v54 }
 0x759   :  { %2821 = vtanh.f32 %v2671_v58 }
 0x760   :  { %v2816_v61 = vpop.eup %2815 }
 0x761   :  { %v2818_v2 = vpop.eup %2817  ;;  %v1699_v5 = vadd.f32 1.0, %v2816_v61 }
 0x762   :  { %v1705_v8 = vadd.f32 1.0, %v2818_v2  ;;  %v2820_v11 = vpop.eup %2819 }
 0x763   :  { %2823 = vrcp.f32 %v1699_v5  ;;  %v2822_v15 = vpop.eup %2821  ;;  %v1712_v33 = vadd.f32 1.0, %v2820_v11  ;;  %v2046_v5 = vld [vmem:[%s3541_s5] ss:$0 sm:$0xff] }
 0x764   :  { %2825 = vrcp.f32 %v1705_v8 }
 0x765   :  { %2827 = vrcp.f32 %v1712_v33 }
 0x76d   :  { %v2824_v19 = vpop.eup %2823 }
 0x76e   :  { %v2826_v24 = vpop.eup %2825  ;;  %v1716_v28 = vmul.f32 %v2824_v19, %v2822_v15 }
 0x76f   :  { %v1715_v39 = vmul.f32 %v2826_v24, %v3472_v57  ;;  %v2828_v46 = vpop.eup %2827 }
 0x771   :  { %v3512_v43 = vadd.f32 %v1716_v28, %v1715_v39 }
 0x773   :  { %2829 = vtanh.f32 %v3512_v43 }
 0x77d   :  { %v2830_v52 = vpop.eup %2829 }
 0x77e   :  { %v1719_v56 = vmul.f32 %v2830_v52, %v2828_v46 }
 0x780   :  { %1790 = vmatmul.mubr.f32.vlgmr.msra.gmra.mrb[14].mxu0 %v1719_v56  ;;  %1861 = vmatmul.mubr.f32.vlgmr.msra.gmra.mrb[14].mxu1 %v1719_v56 }
 0x781   :  { %2621 = vmatpush3.bf16.msra.mxu0 %v2620_v4  ;;  %2096 = vmatprep.mubr.msk.f32.mxu0 %vm2975_vm1, %v2973_v0 }
 0x782   :  { %2622 = vmatprep.subr.bf16.mxu0 %v2974_v6 }
 0x785   :  { %2624 = vmatpush3.bf16.msra.mxu0 %v2623_v18 }
 0x786   :  { %2625 = vmatprep.subr.bf16.mxu0 %v2974_v6 }
 0x789   :  { %2627 = vmatpush3.bf16.msra.mxu0 %v2626_v9 }
 0x78a   :  { %2628 = vmatprep.subr.bf16.mxu0 %v2974_v6 }
 0x78d   :  { %2630 = vmatpush3.bf16.msra.mxu0 %v2629_v23 }
 0x78e   :  { %2631 = vmatprep.subr.bf16.mxu0 %v2974_v6 }
 0x791   :  { %2633 = vmatpush3.bf16.msra.mxu0 %v2632_v30 }
 0x792   :  { %2634 = vmatprep.subr.bf16.mxu0 %v2974_v6 }
 0x795   :  { %2636 = vmatpush3.bf16.msra.mxu0 %v2635_v36 }
 0x796   :  { %2637 = vmatprep.subr.bf16.mxu0 %v2974_v6 }
 0x799   :  { %2639 = vmatpush3.bf16.msra.mxu0 %v2638_v40 }
 0x79a   :  { %2640 = vmatprep.subr.bf16.mxu0 %v2974_v6 }
 0x79d   :  { %2642 = vmatpush3.bf16.msra.mxu0 %v2641_v48 }
 0x853   :  { %v1791_v49 = vpop.f32.mrb[14].mxu0  ;;  %v1862_v51 = vpop.f32.mrb[14].mxu1 }
 0x854   :  { %v2657_v53 = vadd.f32 %v1791_v49, %v3250_v14  ;;  %v1793_v55 = vpop.f32.mrb[15].mxu0  ;;  %v1864_v57 = vpop.f32.mrb[15].mxu1  ;;  %v2673_v25 = vadd.f32 %v1862_v51, %v3259_v44 }
 0x855   :  { %v2658_v59 = vadd.f32 %v1793_v55, %v3252_v16  ;;  %v2674_v0 = vadd.f32 %v1864_v57, %v3256_v37 }
 0x856   :  { %v2043_v62 = vmul.f32 -1.442695, %v2657_v53 }
 0x857   :  { %v2044_v12 = vmul.f32 -1.442695, %v2658_v59  ;;  %v2045_v22 = vmul.f32 -1.442695, %v2674_v0 }
 0x858   :  { %2831 = vpow2.f32 %v2043_v62 }
 0x859   :  { %2833 = vpow2.f32 %v2044_v12 }
 0x85a   :  { %2835 = vpow2.f32 %v2045_v22 }
 0x85b   :  { %2837 = vtanh.f32 %v2673_v25 }
 0x862   :  { %v2832_v29 = vpop.eup %2831 }
 0x863   :  { %v2834_v34 = vpop.eup %2833  ;;  %v1874_v35 = vadd.f32 1.0, %v2832_v29 }
 0x864   :  { %v1880_v38 = vadd.f32 1.0, %v2834_v34  ;;  %v2836_v14 = vpop.eup %2835 }
 0x865   :  { %2839 = vrcp.f32 %v1874_v35  ;;  %v2838_v42 = vpop.eup %2837  ;;  %v1887_v54 = vadd.f32 1.0, %v2836_v14 }
 0x866   :  { %2841 = vrcp.f32 %v1880_v38 }
 0x867   :  { %2843 = vrcp.f32 %v1887_v54 }
 0x86f   :  { %v2840_v16 = vpop.eup %2839 }
 0x870   :  { %v2842_v47 = vpop.eup %2841  ;;  %v1891_v50 = vmul.f32 %v2840_v16, %v2838_v42 }
 0x871   :  { %v1890_v58 = vmul.f32 %v2842_v47, %v3512_v43  ;;  %v2844_v44 = vpop.eup %2843 }
 0x873   :  { %v1892_v37 = vadd.f32 %v1891_v50, %v1890_v58 }
 0x875   :  { %2845 = vtanh.f32 %v1892_v37 }
 0x87f   :  { %v2846_v61 = vpop.eup %2845 }
 0x880   :  { %v1894_v2 = vmul.f32 %v2846_v61, %v2844_v44 }
 0x882   :  { %2097 = vmatmul.mubr.f32.vlgmr.msra.gmra.mrb[16].mxu0 %v1894_v2 }
 0x955   :  { %v1984_v8 = vpop.f32.mrb[16].mxu0 }
 0x956   :  { %v1985_v11 = vadd.f32 %v2046_v5, %v1984_v8  ;;  %v2098_v15 = vpop.f32.mrb[17].mxu0 }
 0x958   :  { %1988 = vst [vmem:[#allocation11] sm:$0xff] %v1985_v11 }
 0x959   :  { %2946 = shalt.err (!%p2943_p8)
}
 0x95a   :  { %s2947_s28 = scalar_lea.hbm %s3542_s6, 128 }
 0x95b   :  { %p2948_p9 = scmp.ne.s32.totalorder %s3542_s6, %s2947_s28  ;;  %p2951_p10 = scmp.lt.u32.totalorder %s2947_s28, %s3542_s6 }
 0x95d   :  { %p2953_p11 = pnand %p2951_p10, %p2948_p9 }
 0x95f   :  { %2956 = shalt.err (!%p2953_p11)
}
 0x960   :  { %1998 = dma.vmem_to_hbm [thread:$0]  %s1996_s24, 128, %s3542_s6, [#allocation5]  }
 0x961   :  { %2963 = dma.done.wait [#allocation5], 128  }
 0x962   :  { %2964 = vsyncadd [#allocation5], 4294967168 }
 0x963   :  { %2002 = vsyncpa [#allocation4], 1 }
 0x964   :  { %2003 = vsyncpa [#allocation7], 1 }
 0x965   :  { %2004 = vsyncpa [#allocation10], 1 }
 0x966   :  { %2005 = vsyncpa [#allocation5], 1 }

</bundles_post_ra>
